<compile_context>
chip_gen: v6e
topology: v6e:2x2x1
jax: 0.10.0
libtpu: 0.0.40
codegen_flags: <defaults>
</compile_context>

<pallas_src>
import jax
import jax.numpy as jnp
from jax import lax
from jax.experimental import pallas as pl
from jax.experimental.pallas import tpu as pltpu

C_HID = 8      # bottleneck width (hard-coded in the module)
GROUPS = 4
ZERO_INIT = False  # True -> faithful to nn.init.zeros_ (output is all zeros)


def _adapter_kernel(x_ref, wd_ref, wmu_t_ref, b_ref, o_ref):
    """Factored low-rank adapter on one token tile, emitted in NCHW order.

    x_ref     : (TN, C)  f32  channels-last token tile
    wd_ref    : (C, 8)   bf16 block-diagonal down-projection
    wmu_t_ref : (C, 8)   bf16 (W_mid @ W_up)^T, i.e. (out_ch, rank)
    b_ref     : (C, 1)   f32  fused bias column
    o_ref     : (C, TN)  NCHW-ordered output tile
    """
    x_bf = x_ref[...].astype(jnp.bfloat16)
    # Down-projection: large operand in natural (M,K)@(K,N) orientation — no
    # XLU transpose of the big activation tile.
    h = jnp.dot(x_bf, wd_ref[...], preferred_element_type=jnp.float32)   # (TN, 8)
    # Up-projection straight into the (C, TN) NCHW layout: A·B^T where only the
    # tiny (TN, 8) intermediate ever needs a transpose (~32 KB, essentially free).
    y = lax.dot_general(
        wmu_t_ref[...], h.astype(jnp.bfloat16),
        dimension_numbers=(((1,), (1,)), ((), ())),
        preferred_element_type=jnp.float32)                              # (C, TN)
    o_ref[...] = (y + b_ref[...]).astype(o_ref.dtype)


def _block_diag_from_conv(w_conv, in_total, out_total, groups):
    """Grouped 1x1 conv weight (out, in/g, 1, 1) -> block-diagonal
    (in_total, out_total) matrix so that y = x @ W matches the grouped conv."""
    w = w_conv.reshape(out_total, in_total // groups)
    in_g = in_total // groups
    out_g = out_total // groups
    full = jnp.zeros((in_total, out_total), w.dtype)
    for g in range(groups):
        blk = w[g * out_g:(g + 1) * out_g, :]            # (out_g, in_g)
        full = full.at[g * in_g:(g + 1) * in_g,
                       g * out_g:(g + 1) * out_g].set(blk.T)
    return full


def _factored_weights(params, C):
    """Fold only W_mid @ W_up; keep the rank-8 factorization explicit."""
    wd = _block_diag_from_conv(params["w_down"], C, C_HID, GROUPS)     # (C, 8)
    wm = _block_diag_from_conv(params["w_mid"], C_HID, C_HID, GROUPS)  # (8, 8)
    wu = _block_diag_from_conv(params["w_up"], C_HID, C, GROUPS)       # (8, C)
    wmu = wm @ wu                                                      # (8, C)
    b_fused = (params["b_down"] @ wmu
               + params["b_mid"] @ wu
               + params["b_up"])                                       # (C,)
    return wd, wmu, b_fused


def bi_direct_adapter_forward(x_nhwc, params, *, tile_n=2048):
    """x_nhwc: (B, D1, D2, C) float32.  Returns (B, D1, D2, C), reproducing the
    PyTorch forward (grouped 1x1 convs + the final NCHW .view() quirk)."""
    B, D1, D2, C = x_nhwc.shape
    HW = D1 * D2

    wd, wmu, b_fused = _factored_weights(params, C)
    wd_bf = wd.astype(jnp.bfloat16)                 # (C, 8)
    wmu_t_bf = wmu.T.astype(jnp.bfloat16)           # (C, 8)
    b_col = b_fused.reshape(C, 1).astype(jnp.float32)

    x_tok = x_nhwc.reshape(B, HW, C)                # token-major, channels-last

    # Lane-dense tokens: pad the token axis up to a multiple of 128 so output
    # stores are never masked (per-token op -> padded tokens are simply sliced
    # off afterwards and never affect valid outputs).
    HW_eff = ((HW + 127) // 128) * 128
    if HW_eff != HW:
        x_tok = jnp.pad(x_tok, ((0, 0), (0, HW_eff - HW), (0, 0)))

    # Token tile: big (amortizes ~0.35 us/step overhead), 128-aligned, and small
    # enough that double-buffered in+out tiles stay under the 32 MiB scoped VMEM
    # limit on every generation (incl. v7x's 64 MiB physical VMEM).
    tn = min(HW_eff, max(128, (tile_n // 128) * 128))
    num_tiles = pl.cdiv(HW_eff, tn)

    cost = pl.CostEstimate(
        flops=int(2 * B * HW_eff * (C * C_HID + C_HID * C)),
        transcendentals=0,
        bytes_accessed=int(2 * B * HW_eff * C * 4          # x in + out (f32)
                           + 2 * C * C_HID * 2 + C * 4),   # tiny weights/bias
    )

    out_nchw = pl.pallas_call(
        _adapter_kernel,
        out_shape=jax.ShapeDtypeStruct((B, C, HW_eff), x_nhwc.dtype),
        grid_spec=pltpu.PrefetchScalarGridSpec(
            num_scalar_prefetch=0,
            grid=(B, num_tiles),
            in_specs=[
                # (tn, C) token tile; leading batch dim squeezed out.
                pl.BlockSpec((None, tn, C), lambda b, t: (b, t, 0)),
                # Tiny factored weights / bias: constant block index -> fetched
                # once and kept resident across the whole grid (~20 KB VMEM).
                pl.BlockSpec((C, C_HID), lambda b, t: (0, 0)),
                pl.BlockSpec((C, C_HID), lambda b, t: (0, 0)),
                pl.BlockSpec((C, 1), lambda b, t: (0, 0)),
            ],
            # NCHW-ordered output: lane dim = tokens (multiple of 128) ->
            # unmasked dense stores.
            out_specs=pl.BlockSpec((None, C, tn), lambda b, t: (b, 0, t)),
        ),
        compiler_params=pltpu.CompilerParams(
            dimension_semantics=("parallel", "parallel"),
            vmem_limit_bytes=32 * 1024 * 1024,
        ),
        cost_estimate=cost,
    )(x_tok, wd_bf, wmu_t_bf, b_col)

    if HW_eff != HW:
        out_nchw = out_nchw[:, :, :HW]

    # PyTorch computes x_up in NCHW and then does .view(B, D1, D2, C): a raw
    # reinterpretation of contiguous NCHW memory.  out_nchw already IS the
    # contiguous (B, C, H*W) buffer, so the .view is a free reshape here.
    return out_nchw.reshape(B, D1, D2, C)


def make_params(key, C, dtype=jnp.float32):
    if ZERO_INIT:
        return {
            "w_down": jnp.zeros((C_HID, C // GROUPS, 1, 1), dtype),
            "b_down": jnp.zeros((C_HID,), dtype),
            "w_mid": jnp.zeros((C_HID, C_HID // GROUPS, 1, 1), dtype),
            "b_mid": jnp.zeros((C_HID,), dtype),
            "w_up": jnp.zeros((C, C_HID // GROUPS, 1, 1), dtype),
            "b_up": jnp.zeros((C,), dtype),
        }
    ks = jax.random.split(key, 6)
    return {
        "w_down": 0.02 * jax.random.normal(ks[0], (C_HID, C // GROUPS, 1, 1), dtype),
        "b_down": 0.02 * jax.random.normal(ks[1], (C_HID,), dtype),
        "w_mid": 0.02 * jax.random.normal(ks[2], (C_HID, C_HID // GROUPS, 1, 1), dtype),
        "b_mid": 0.02 * jax.random.normal(ks[3], (C_HID,), dtype),
        "w_up": 0.02 * jax.random.normal(ks[4], (C, C_HID // GROUPS, 1, 1), dtype),
        "b_up": 0.02 * jax.random.normal(ks[5], (C,), dtype),
    }


def _reference_forward(x_nhwc, params):
    """Pure-JAX f32 reference: sequential (unfused) grouped 1x1 convs + .view quirk."""
    B, D1, D2, C = x_nhwc.shape
    x_flat = x_nhwc.reshape(-1, C)
    wd = _block_diag_from_conv(params["w_down"], C, C_HID, GROUPS)
    wm = _block_diag_from_conv(params["w_mid"], C_HID, C_HID, GROUPS)
    wu = _block_diag_from_conv(params["w_up"], C_HID, C, GROUPS)
    h = x_flat @ wd + params["b_down"]
    h = h @ wm + params["b_mid"]
    o = h @ wu + params["b_up"]
    o = o.reshape(B, D1, D2, C)
    return jnp.transpose(o, (0, 3, 1, 2)).reshape(B, D1, D2, C)


if __name__ == "__main__":
    key = jax.random.PRNGKey(0)
    kx, kp = jax.random.split(key)

    # Module default: input_size=640 channels; small spatial extent.
    B, D1, D2, C = 2, 16, 16, 640
    x = jax.random.normal(kx, (B, D1, D2, C), jnp.float32)
    params = make_params(kp, C)

    out = jax.block_until_ready(bi_direct_adapter_forward(x, params))

    ref = _reference_forward(x, params)
    assert out.shape == (B, D1, D2, C)
    # bf16 MXU operands with f32 accumulation: tolerance relaxed accordingly
    # (output magnitudes ~2e-2, bf16-induced error ~1e-6 abs).
    assert jnp.allclose(out, ref, atol=2e-5, rtol=5e-3), "mismatch vs reference"

    print("KERNEL_OK")
</pallas_src>

<mosaic_0001>
module attributes {stable_mosaic.version = 11 : i64} {
  func.func @_adapter_kernel(%arg0: i32, %arg1: i32, %arg2: memref<1x256x640xf32, #tpu.memory_space<vmem>>, %arg3: memref<640x8xbf16, #tpu.memory_space<vmem>>, %arg4: memref<640x8xbf16, #tpu.memory_space<vmem>>, %arg5: memref<640x1xf32, #tpu.memory_space<vmem>>, %arg6: memref<1x640x256xf32, #tpu.memory_space<vmem>>) attributes {dimension_semantics = [#tpu.dimension_semantics<parallel>, #tpu.dimension_semantics<parallel>], iteration_bounds = array<i64: 2, 1>, scalar_prefetch = 0 : i64, scratch_operands = 0 : i64, tpu.core_type = #tpu.core_type<tc>, window_params = [{transform_indices = @transform_0, window_bounds = array<i64: 1, 256, 640>}, {pipeline_mode = #tpu.pipeline_mode<synchronous>, transform_indices = @transform_1, window_bounds = array<i64: 640, 8>}, {pipeline_mode = #tpu.pipeline_mode<synchronous>, transform_indices = @transform_2, window_bounds = array<i64: 640, 8>}, {pipeline_mode = #tpu.pipeline_mode<synchronous>, transform_indices = @transform_3, window_bounds = array<i64: 640, 1>}, {transform_indices = @transform_4, window_bounds = array<i64: 1, 640, 256>}]} {
    %c0 = arith.constant 0 : index
    %c0_0 = arith.constant 0 : index
    %c0_1 = arith.constant 0 : index
    %0 = vector.load %arg2[%c0, %c0_0, %c0_1] : memref<1x256x640xf32, #tpu.memory_space<vmem>>, vector<1x256x640xf32>
    %1 = vector.shape_cast %0 : vector<1x256x640xf32> to vector<256x640xf32>
    %2 = arith.truncf %1 : vector<256x640xf32> to vector<256x640xbf16>
    %c0_2 = arith.constant 0 : index
    %c0_3 = arith.constant 0 : index
    %3 = vector.load %arg3[%c0_2, %c0_3] : memref<640x8xbf16, #tpu.memory_space<vmem>>, vector<640x8xbf16>
    %cst = arith.constant dense<0.000000e+00> : vector<256x8xf32>
    %4 = tpu.matmul %2, %3, %cst {dimension_numbers = #tpu.dot_dimension_numbers<[1], [0], [0], [1], [0, 0, 1, 1], [], []>} : vector<256x640xbf16>, vector<640x8xbf16>, vector<256x8xf32> -> vector<256x8xf32>
    %c0_4 = arith.constant 0 : index
    %c0_5 = arith.constant 0 : index
    %5 = vector.load %arg4[%c0_4, %c0_5] : memref<640x8xbf16, #tpu.memory_space<vmem>>, vector<640x8xbf16>
    %6 = arith.truncf %4 : vector<256x8xf32> to vector<256x8xbf16>
    %cst_6 = arith.constant dense<0.000000e+00> : vector<640x256xf32>
    %7 = tpu.matmul %5, %6, %cst_6 {dimension_numbers = #tpu.dot_dimension_numbers<[1], [1], [0], [0], [0, 0, 1, 0], [], []>} : vector<640x8xbf16>, vector<256x8xbf16>, vector<640x256xf32> -> vector<640x256xf32>
    %c0_7 = arith.constant 0 : index
    %c0_8 = arith.constant 0 : index
    %8 = vector.load %arg5[%c0_7, %c0_8] : memref<640x1xf32, #tpu.memory_space<vmem>>, vector<640x1xf32>
    %9 = vector.broadcast %8 : vector<640x1xf32> to vector<640x256xf32>
    %10 = arith.addf %7, %9 : vector<640x256xf32>
    %c0_9 = arith.constant 0 : index
    %c0_10 = arith.constant 0 : index
    %c0_11 = arith.constant 0 : index
    %11 = vector.load %arg6[%c0_9, %c0_10, %c0_11] : memref<1x640x256xf32, #tpu.memory_space<vmem>>, vector<1x640x256xf32>
    %12 = vector.shape_cast %11 : vector<1x640x256xf32> to vector<640x256xf32>
    %13 = vector.shape_cast %10 : vector<640x256xf32> to vector<1x640x256xf32>
    tpu.vector_store %arg6[%c0_9, %c0_10, %c0_11], %13 {strides = array<i32>} : memref<1x640x256xf32, #tpu.memory_space<vmem>>, vector<1x640x256xf32>,
    return
  }
  func.func @transform_0(%arg0: i32, %arg1: i32) -> (i32, i32, i32) {
    %c0_i32 = arith.constant 0 : i32
    %c0_i32_0 = arith.constant 0 : i32
    return %arg0, %arg1, %c0_i32 : i32, i32, i32
  }
  func.func @transform_1(%arg0: i32, %arg1: i32) -> (i32, i32) {
    %c0_i32 = arith.constant 0 : i32
    %c0_i32_0 = arith.constant 0 : i32
    %c0_i32_1 = arith.constant 0 : i32
    return %c0_i32, %c0_i32_0 : i32, i32
  }
  func.func @transform_2(%arg0: i32, %arg1: i32) -> (i32, i32) {
    %c0_i32 = arith.constant 0 : i32
    %c0_i32_0 = arith.constant 0 : i32
    %c0_i32_1 = arith.constant 0 : i32
    return %c0_i32, %c0_i32_0 : i32, i32
  }
  func.func @transform_3(%arg0: i32, %arg1: i32) -> (i32, i32) {
    %c0_i32 = arith.constant 0 : i32
    %c0_i32_0 = arith.constant 0 : i32
    %c0_i32_1 = arith.constant 0 : i32
    return %c0_i32, %c0_i32_0 : i32, i32
  }
  func.func @transform_4(%arg0: i32, %arg1: i32) -> (i32, i32, i32) {
    %c0_i32 = arith.constant 0 : i32
    %c0_i32_0 = arith.constant 0 : i32
    return %arg0, %c0_i32, %arg1 : i32, i32, i32
  }
}

</mosaic_0001>

<bundles_post_ra>
// kernel: tpu_custom_call.1
= control target key start
LH: loop header
LB: loop body
LE: loop exit
PB: predicated region body
PF: predicated region fallthrough
CT: control target
= control target key end

     0   :  { %9 = vsyncpa [#allocation3], 0  ;;  %s5200_s0 = inlined_call_operand.hbm [shape: f32[2,256,640], index: 0, kind: input, shape index: {}]   ;;  %s5201_s1 = inlined_call_operand.vmem [shape: bf16[640,8], index: 1, kind: input, shape index: {}]   ;;  %s5202_s2 = inlined_call_operand.vmem [shape: bf16[640,8], index: 2, kind: input, shape index: {}]   ;;  %s5203_s3 = inlined_call_operand.vmem [shape: f32[640,1], index: 3, kind: input, shape index: {}]   ;;  %s5204_s4 = inlined_call_operand.hbm [shape: f32[2,640,256], index: 4, kind: output, shape index: {}]  }
   0x1   :  { %11 = vsyncpa [#allocation3 + $0x1], 0 }
   0x2   :  { %12 = vsyncpa [#allocation4], 0 }
   0x3   :  { %14 = vsyncpa [#allocation4 + $0x1], 0  ;;  %s3770_s15 = smov 0   ;;  %s3772_s16 = smov 0  }
   0x4   :  { %s3774_s17 = smov 0   ;;  %s3776_s18 = smov 0  }
   0x5   :  { %s3778_s19 = smov 0   ;;  %s3780_s20 = smov 0  }
   0x6 LB: > { %s2922_s21 = sadd.s32 4294967295, %s3736_s20   ;;  %s2923_s22 = sadd.s32 4294967294, %s3736_s20   ;;  %s3736_s20 = sphi %s3780_s20, %s20_s20   ;;  %s3732_s19 = sphi %s3778_s19, %s5222_s19   ;;  %s3728_s18 = sphi %s3776_s18, %s5221_s18   ;;  %s3724_s17 = sphi %s3774_s17, %s5220_s17   ;;  %s3720_s16 = sphi %s3772_s16, %s5219_s16   ;;  %s3716_s15 = sphi %s3770_s15, %s5218_s15  }
   0x7   : > { %s32_s23 = sadd.s32 1, %s3732_s19  ;;  %s41_s24 = sadd.s32 1, %s3724_s17 }
   0x8   : > { %p34_p0 = scmp.ge.s32.totalorder %s32_s23, 2  ;;  %p48_p1 = scmp.ne.s32.totalorder %s3724_s17, %s3720_s16 }
   0x9   : > { %p49_p2 = scmp.eq.s32.totalorder %s3736_s20, 0  ;;  %p54_p3 = scmp.ne.s32.totalorder %s3720_s16, %s3716_s15 }
   0xa   : > { %s5224_s23 = smov (%p34_p0, %s32_s23), 0  ;;  %p55_p5 = scmp.eq.s32.totalorder %s2922_s21, 0 }
   0xb   : > { %p3811_p4 = por %p49_p2, %p48_p1  ;;  %s36_s26 = ssub.s32 %s3732_s19, %s5224_s23 }
   0xc   : > { %p143_p6 = scmp.eq.s32.totalorder %s2922_s21, 1  ;;  %p39_p7 = scmp.eq.s32.totalorder %s36_s26, 0 }
   0xd   : > { %p3817_p8 = por %p55_p5, %p54_p3  ;;  %p149_p10 = scmp.eq.s32.totalorder %s2923_s22, 1 }
   0xe   : > { %p3821_p9 = por %p143_p6, %p48_p1  ;;  %p3491_p13 = scmp.lt.s32.totalorder %s3736_s20, 2 }
   0xf   : > { %s3826_s29 = scalar_select %p39_p7, %s3724_s17, %s41_s24  }
  0x10   : > { %p3828_p11 = por %p149_p10, %p54_p3  ;;  %s178_s5 = sand.u32 1, %s3724_s17  }
  0x11   : > { %s3475_s6 = smul.u32 1280, %s178_s5  ;;  %p3838_p0 = pnand %p3491_p13, %p3811_p4 }
  0x12   : > { %s3476_s7 = smul.u32 20480, %s3732_s19  ;;  %p2927_p1 = scmp.ge.s32.totalorder %s3736_s20, 1 }
  0x13   : > { %s182_s12 = scalar_lea.vmem [#allocation2], %s3475_s6  ;;  %s179_s14 = scalar_lea.sflag [#allocation3], %s178_s5 }
  0x14   : > { %s191_s11 = scalar_lea.hbm %s5200_s0, %s3476_s7  ;;  %s192_s13 = sshll.u32 %s182_s12, 4  ;;  %s193_s13 = int_to_ptr.vmem [resolvable:$true] %s192_s13 }
  0x15   : > { %p3630_p2 = pneg %p3838_p0  ;;  %s3641_s21 = scalar_lea.vmem %s193_s13, 20480 }
  0x16   : > { %p3642_p3 = scmp.ne.s32.totalorder %s193_s13, %s3641_s21  ;;  %s3738_s22 = smov [#allocation2]  }
  0x17   : > { %s3646_s24 = sshll.u32 %s3738_s22, 4  ;;  %s3647_s24 = int_to_ptr.vmem [resolvable:$false] %s3646_s24 }
  0x18   : > { %p3644_p5 = pnand %p3642_p3, %p3630_p2  ;;  %s3648_s25 = scalar_lea.vmem %s3647_s24, 40960 }
  0x19   : > { %p3649_p4 = scmp.lt.s32.totalorder %s193_s13, %s3647_s24  ;;  %p3650_p7 = scmp.lt.s32.totalorder %s3648_s25, %s3641_s21 }
  0x1a   : > { %p3645_p6 = pneg %p3644_p5 }
  0x1b   : > { %p3651_p10 = por %p3650_p7, %p3649_p4 }
  0x1d   : > { %p3652_p13 = pnand %p3651_p10, %p3645_p6 }
  0x1f   : > { %3655 = shalt.err (!%p3652_p13)
}
  0x20   : > { %s3739_s26 = smov 640   ;;  %s3740_s5 = smov 40  }
  0x21   : > { %3486 = dma.hbm_to_vmem [thread:$0]  (!%p3838_p0), %s191_s11, 20480, %s193_s13, %s179_s14, %s3739_s26, %s3739_s26, %s3740_s5  }
  0x22   : > { %p200_p12 = scmp.lt.s32.totalorder %s3736_s20, 3 }
  0x24   : > { %p201_p2 = pnand %p2927_p1, %p200_p12 }
  0x25   : > { %s3854_s6 = sand.u32 (!%p201_p2), 1, %s3720_s16  }
  0x26   : > { %204 = sbr.rel (%p201_p2) target bundleno = 926 (0x39e), region = 36  ;;  %s207_s9 = scalar_lea.sflag (!%p201_p2), [#allocation3], %s3854_s6 }
  0x27   : > { %s3477_s7 = smul.u32 (!%p201_p2), 1280, %s3854_s6 }
  0x29   : > { %s3860_s10 = scalar_lea.vmem (!%p201_p2), [#allocation2], %s3477_s7 }
  0x2b   : > { %3707 = dma.done.wait (%p3817_p8), %s207_s9, 20480  }
  0x2c   : > { %3709 = vsyncadd (%p3817_p8), %s207_s9, 4294946816  ;;  %v3548_v0 = vld [vmem:[%s5201_s1 + $0x78] sm:$0xff]   ;;  %v3552_v4 = vld [vmem:[%s5201_s1 + $0x70] sm:$0xff]   ;;  %vm2057_vm0 = vcmask 64512   ;;  %s4920_s13 = scalar_lea.vmem [#allocation5], %s3477_s7  ;;  %s3478_s7 = smul.u32 20480, %s3728_s18 }
  0x2d   : > { %v3549_v1 = vld [vmem:[%s5201_s1 + $0xf8] sm:$0xff]   ;;  %3051 = vmatprep.subr.bf16.mxu0 %v3548_v0  ;;  %v3553_v5 = vld [vmem:[%s5201_s1 + $0xf0] sm:$0xff]   ;;  %v3556_v8 = vld [vmem:[%s5201_s1 + $0x68] sm:$0xff]   ;;  %s2835_s14 = sshll.u32 %s4920_s13, 4  ;;  %s2820_s18 = scalar_lea.sflag [#allocation4], %s3854_s6  ;;  %s5150_s14 = int_to_ptr.vmem [resolvable:$true] %s2835_s14 }
  0x2e   : > { %v3550_v2 = vld [vmem:[%s5201_s1 + $0x38] sm:$0xff]   ;;  %3163 = vmatprep.subr.bf16.mxu1 %v3549_v1  ;;  %v3554_v6 = vld [vmem:[%s5201_s1 + $0x30] sm:$0xff]   ;;  %v3557_v9 = vld [vmem:[%s5201_s1 + $0xe8] sm:$0xff]   ;;  %s5148_s24 = scalar_lea.hbm %s5204_s4, %s3478_s7  ;;  %s3656_s27 = scalar_lea.vmem %s5150_s14, 20480 }
  0x2f   : > { %v3551_v3 = vld [vmem:[%s5201_s1 + $0xb8] sm:$0xff]   ;;  %3052 = vmatpush3.bf16.msra.mxu0 %v3550_v2  ;;  %v3555_v7 = vld [vmem:[%s5201_s1 + $0xb0] sm:$0xff]   ;;  %v3558_v10 = vld [vmem:[%s5201_s1 + $0x28] sm:$0xff]   ;;  %p3657_p8 = scmp.ne.s32.totalorder %s5150_s14, %s3656_s27  ;;  %s3742_s25 = smov [#allocation5]  }
  0x30   : > { %3164 = vmatpush3.bf16.msra.mxu1 %v3551_v3  ;;  %3053 = vmatprep.subr.bf16.mxu0 %v3552_v4  ;;  %v3559_v11 = vld [vmem:[%s5201_s1 + $0xa8] sm:$0xff]   ;;  %v3560_v12 = vld [vmem:[%s5201_s1 + $0x60] sm:$0xff]   ;;  %v3564_v16 = vld [vmem:[%s5201_s1 + $0x58] sm:$0xff]   ;;  %s3660_s26 = sshll.u32 %s3742_s25, 4  ;;  %s3661_s26 = int_to_ptr.vmem [resolvable:$false] %s3660_s26 }
  0x31   : > { %3165 = vmatprep.subr.bf16.mxu1 %v3553_v5  ;;  %v3561_v13 = vld [vmem:[%s5201_s1 + $0xe0] sm:$0xff]   ;;  %v3565_v17 = vld [vmem:[%s5201_s1 + $0xd8] sm:$0xff]   ;;  %v3568_v20 = vld [vmem:[%s5201_s1 + $0x50] sm:$0xff]   ;;  %p3658_p12 = pnand %p3657_p8, %p3821_p9  ;;  %s3662_s5 = scalar_lea.vmem %s3661_s26, 40960 }
  0x32   : > { %v3562_v14 = vld [vmem:[%s5201_s1 + $0x20] sm:$0xff]   ;;  %v3566_v18 = vld [vmem:[%s5201_s1 + $0x18] sm:$0xff]   ;;  %v3569_v21 = vld [vmem:[%s5201_s1 + $0xd0] sm:$0xff]   ;;  %p3663_p1 = scmp.lt.s32.totalorder %s5150_s14, %s3661_s26  ;;  %p3664_p3 = scmp.lt.s32.totalorder %s3662_s5, %s3656_s27 }
  0x33   : > { %3054 = vmatpush3.bf16.msra.mxu0 %v3554_v6  ;;  %v3563_v15 = vld [vmem:[%s5201_s1 + $0xa0] sm:$0xff]   ;;  %v3567_v19 = vld [vmem:[%s5201_s1 + $0x98] sm:$0xff]   ;;  %v3570_v22 = vld [vmem:[%s5201_s1 + $0x10] sm:$0xff]   ;;  %p3659_p0 = pneg %p3658_p12 }
  0x34   : > { %3166 = vmatpush3.bf16.msra.mxu1 %v3555_v7  ;;  %3055 = vmatprep.subr.bf16.mxu0 %v3556_v8  ;;  %v3571_v23 = vld [vmem:[%s5201_s1 + $0x90] sm:$0xff]   ;;  %v3572_v24 = vld [vmem:[%s5201_s1 + $0x48] sm:$0xff]   ;;  %v3576_v28 = vld [vmem:[%s5201_s1 + $0x40] sm:$0xff]   ;;  %p3665_p5 = por %p3664_p3, %p3663_p1 }
  0x35   : > { %3167 = vmatprep.subr.bf16.mxu1 %v3557_v9  ;;  %v3573_v25 = vld [vmem:[%s5201_s1 + $0xc8] sm:$0xff]   ;;  %v3577_v29 = vld [vmem:[%s5201_s1 + $0xc0] sm:$0xff]   ;;  %v244_v33 = vld [vmem:[%s3860_s10 + $0x30] sm:$0xff] }
  0x36   : > { %v3574_v26 = vld [vmem:[%s5201_s1 + $0x8] sm:$0xff]   ;;  %v3578_v30 = vld [vmem:[%s5201_s1] sm:$0xff]   ;;  %v241_v34 = vld [vmem:[%s3860_s10 + $0x18] sm:$0xff]  ;;  %p3666_p6 = pnand %p3665_p5, %p3659_p0 }
  0x37   : > { %3056 = vmatpush3.bf16.msra.mxu0 %v3558_v10  ;;  %v3575_v27 = vld [vmem:[%s5201_s1 + $0x88] sm:$0xff]   ;;  %v3579_v31 = vld [vmem:[%s5201_s1 + $0x80] sm:$0xff]   ;;  %v240_v41 = vld [vmem:[%s3860_s10 + $0x10] sm:$0xff] }
  0x38   : > { %3168 = vmatpush3.bf16.msra.mxu1 %v3559_v11  ;;  %3057 = vmatprep.subr.bf16.mxu0 %v3560_v12  ;;  %v239_v32 = vld [vmem:[%s3860_s10 + $0x8] sm:$0xff]  ;;  %v246_v36 = vld [vmem:[%s3860_s10 + $0x40] sm:$0xff]  ;;  %v245_v42 = vld [vmem:[%s3860_s10 + $0x38] sm:$0xff] }
  0x39   : > { %3169 = vmatprep.subr.bf16.mxu1 %v3561_v13  ;;  %v399_v35 = vpack.c.bf16 %v244_v33, %v239_v32  ;;  %v238_v37 = vld [vmem:[%s3860_s10] sm:$0xff]  ;;  %v243_v38 = vld [vmem:[%s3860_s10 + $0x28] sm:$0xff]  ;;  %v401_v39 = vpack.c.bf16 %v246_v36, %v241_v34  ;;  %v249_v43 = vld [vmem:[%s3860_s10 + $0x58] sm:$0xff]  ;;  %v400_v44 = vpack.c.bf16 %v245_v42, %v240_v41 }
  0x3a   : > { %v398_v40 = vpack.c.bf16 %v243_v38, %v238_v37  ;;  %v254_v45 = vld [vmem:[%s3860_s10 + $0x80] sm:$0xff]  ;;  %v251_v46 = vld [vmem:[%s3860_s10 + $0x68] sm:$0xff]  ;;  %v256_v47 = vld [vmem:[%s3860_s10 + $0x90] sm:$0xff] }
  0x3b   : > { %3058 = vmatpush3.bf16.msra.mxu0 %v3562_v14  ;;  %830 = vmatprep.mubr.bf16.mxu0 %v399_v35  ;;  %v404_v48 = vpack.c.bf16 %v254_v45, %v249_v43  ;;  %v406_v49 = vpack.c.bf16 %v256_v47, %v251_v46  ;;  %v248_v50 = vld [vmem:[%s3860_s10 + $0x50] sm:$0xff]  ;;  %v253_v51 = vld [vmem:[%s3860_s10 + $0x78] sm:$0xff]  ;;  %v250_v52 = vld [vmem:[%s3860_s10 + $0x60] sm:$0xff] }
  0x3c   : > { %3170 = vmatpush3.bf16.msra.mxu1 %v3563_v15  ;;  %3059 = vmatprep.subr.bf16.mxu0 %v3564_v16  ;;  %v255_v53 = vld [vmem:[%s3860_s10 + $0x88] sm:$0xff]  ;;  %v264_v55 = vld [vmem:[%s3860_s10 + $0xd0] sm:$0xff]  ;;  %v261_v56 = vld [vmem:[%s3860_s10 + $0xb8] sm:$0xff]  ;;  %v403_v58 = vpack.c.bf16 %v253_v51, %v248_v50 }
  0x3d   : > { %3171 = vmatprep.subr.bf16.mxu1 %v3565_v17  ;;  %991 = vmatprep.mubr.bf16.mxu1 %v401_v39  ;;  %v259_v54 = vld [vmem:[%s3860_s10 + $0xa8] sm:$0xff]  ;;  %v266_v57 = vld [vmem:[%s3860_s10 + $0xe0] sm:$0xff]  ;;  %v405_v59 = vpack.c.bf16 %v255_v53, %v250_v52  ;;  %v260_v0 = vld [vmem:[%s3860_s10 + $0xb0] sm:$0xff] }
  0x3e   : > { %v409_v60 = vpack.c.bf16 %v264_v55, %v259_v54  ;;  %v411_v61 = vpack.c.bf16 %v266_v57, %v261_v56  ;;  %v258_v62 = vld [vmem:[%s3860_s10 + $0xa0] sm:$0xff]  ;;  %v263_v63 = vld [vmem:[%s3860_s10 + $0xc8] sm:$0xff]  ;;  %v265_v1 = vld [vmem:[%s3860_s10 + $0xd8] sm:$0xff] }
  0x3f   : > { %3060 = vmatpush3.bf16.msra.mxu0 %v3566_v18  ;;  %v269_v2 = vld [vmem:[%s3860_s10 + $0xf8] sm:$0xff]  ;;  %v274_v3 = vld [vmem:[%s3860_s10 + $0x120] sm:$0xff]  ;;  %v271_v4 = vld [vmem:[%s3860_s10 + $0x108] sm:$0xff]  ;;  %v408_v6 = vpack.c.bf16 %v263_v63, %v258_v62  ;;  %v410_v7 = vpack.c.bf16 %v265_v1, %v260_v0 }
  0x40   : > { %3172 = vmatpush3.bf16.msra.mxu1 %v3567_v19  ;;  %3061 = vmatprep.subr.bf16.mxu0 %v3568_v20  ;;  %v276_v5 = vld [vmem:[%s3860_s10 + $0x130] sm:$0xff]  ;;  %v414_v8 = vpack.c.bf16 %v274_v3, %v269_v2  ;;  %v273_v11 = vld [vmem:[%s3860_s10 + $0x118] sm:$0xff]  ;;  %v270_v12 = vld [vmem:[%s3860_s10 + $0x100] sm:$0xff] }
  0x41   : > { %3173 = vmatprep.subr.bf16.mxu1 %v3569_v21  ;;  %v416_v9 = vpack.c.bf16 %v276_v5, %v271_v4  ;;  %v268_v10 = vld [vmem:[%s3860_s10 + $0xf0] sm:$0xff]  ;;  %v275_v13 = vld [vmem:[%s3860_s10 + $0x128] sm:$0xff]  ;;  %v281_v16 = vld [vmem:[%s3860_s10 + $0x158] sm:$0xff] }
  0x42   : > { %v279_v14 = vld [vmem:[%s3860_s10 + $0x148] sm:$0xff]  ;;  %v284_v15 = vld [vmem:[%s3860_s10 + $0x170] sm:$0xff]  ;;  %v286_v17 = vld [vmem:[%s3860_s10 + $0x180] sm:$0xff]  ;;  %v413_v18 = vpack.c.bf16 %v273_v11, %v268_v10  ;;  %v415_v20 = vpack.c.bf16 %v275_v13, %v270_v12 }
  0x43   : > { %3062 = vmatpush3.bf16.msra.mxu0 %v3570_v22  ;;  %v3580_v19 = vld [vmem:[%s5201_s1 + $0x138] sm:$0xff]   ;;  %v419_v21 = vpack.c.bf16 %v284_v15, %v279_v14  ;;  %v421_v22 = vpack.c.bf16 %v286_v17, %v281_v16  ;;  %v288_v36 = vld [vmem:[%s3860_s10 + $0x190] sm:$0xff]  ;;  %v290_v38 = vld [vmem:[%s3860_s10 + $0x1a0] sm:$0xff] }
  0x44   : > { %3174 = vmatpush3.bf16.msra.mxu1 %v3571_v23  ;;  %3063 = vmatprep.subr.bf16.mxu0 %v3572_v24  ;;  %v278_v23 = vld [vmem:[%s3860_s10 + $0x140] sm:$0xff]  ;;  %v283_v24 = vld [vmem:[%s3860_s10 + $0x168] sm:$0xff]  ;;  %v293_v37 = vld [vmem:[%s3860_s10 + $0x1b8] sm:$0xff] }
  0x45   : > { %3175 = vmatprep.subr.bf16.mxu1 %v3573_v25  ;;  %v280_v25 = vld [vmem:[%s3860_s10 + $0x150] sm:$0xff]  ;;  %v418_v32 = vpack.c.bf16 %v283_v24, %v278_v23  ;;  %v3582_v39 = vld [vmem:[%s5201_s1 + $0x128] sm:$0xff]   ;;  %v301_v43 = vld [vmem:[%s3860_s10 + $0x1f8] sm:$0xff]  ;;  %v423_v45 = vpack.c.bf16 %v293_v37, %v288_v36 }
  0x46   : > { %v299_v41 = vld [vmem:[%s3860_s10 + $0x1e8] sm:$0xff]  ;;  %v304_v42 = vld [vmem:[%s3860_s10 + $0x210] sm:$0xff]  ;;  %v298_v50 = vld [vmem:[%s3860_s10 + $0x1e0] sm:$0xff] }
  0x47   : > { %3064 = vmatpush3.bf16.msra.mxu0 %v3574_v26  ;;  %v285_v26 = vld [vmem:[%s3860_s10 + $0x178] sm:$0xff]  ;;  %v429_v47 = vpack.c.bf16 %v304_v42, %v299_v41  ;;  %v303_v51 = vld [vmem:[%s3860_s10 + $0x208] sm:$0xff]  ;;  %v300_v53 = vld [vmem:[%s3860_s10 + $0x1f0] sm:$0xff] }
  0x48   : > { %3176 = vmatpush3.bf16.msra.mxu1 %v3575_v27  ;;  %3065 = vmatprep.subr.bf16.mxu0 %v3576_v28  ;;  %v289_v27 = vld [vmem:[%s3860_s10 + $0x198] sm:$0xff]  ;;  %v294_v28 = vld [vmem:[%s3860_s10 + $0x1c0] sm:$0xff]  ;;  %v420_v33 = vpack.c.bf16 %v285_v26, %v280_v25  ;;  %v311_v57 = vld [vmem:[%s3860_s10 + $0x248] sm:$0xff] }
  0x49   : > { %3177 = vmatprep.subr.bf16.mxu1 %v3577_v29  ;;  %v291_v29 = vld [vmem:[%s3860_s10 + $0x1a8] sm:$0xff]  ;;  %v424_v34 = vpack.c.bf16 %v294_v28, %v289_v27  ;;  %v3584_v52 = vld [vmem:[%s5201_s1 + $0x118] sm:$0xff]   ;;  %v314_v56 = vld [vmem:[%s3860_s10 + $0x260] sm:$0xff] }
  0x4a   : > { %v305_v54 = vld [vmem:[%s3860_s10 + $0x218] sm:$0xff]  ;;  %v3586_v0 = vld [vmem:[%s5201_s1 + $0x108] sm:$0xff]   ;;  %v308_v1 = vld [vmem:[%s3860_s10 + $0x230] sm:$0xff] }
  0x4b   : > { %3066 = vmatpush3.bf16.msra.mxu0 %v3578_v30  ;;  %v296_v30 = vld [vmem:[%s3860_s10 + $0x1d0] sm:$0xff]  ;;  %v309_v55 = vld [vmem:[%s3860_s10 + $0x238] sm:$0xff]  ;;  %v310_v3 = vld [vmem:[%s3860_s10 + $0x240] sm:$0xff] }
  0x4c   : > { %3178 = vmatpush3.bf16.msra.mxu1 %v3579_v31  ;;  %3395 = vmatprep.subr.bf16.mxu0 %v3580_v19  ;;  %v3581_v31 = vld [vmem:[%s5201_s1 + $0x130] sm:$0xff]   ;;  %v426_v35 = vpack.c.bf16 %v296_v30, %v291_v29  ;;  %v434_v62 = vpack.c.bf16 %v314_v56, %v309_v55  ;;  %v313_v2 = vld [vmem:[%s3860_s10 + $0x258] sm:$0xff]  ;;  %v315_v4 = vld [vmem:[%s3860_s10 + $0x268] sm:$0xff] }
  0x4d   : > { %v319_v5 = vld [vmem:[%s3860_s10 + $0x288] sm:$0xff]  ;;  %v433_v10 = vpack.c.bf16 %v313_v2, %v308_v1  ;;  %v435_v11 = vpack.c.bf16 %v315_v4, %v310_v3  ;;  %v318_v14 = vld [vmem:[%s3860_s10 + $0x280] sm:$0xff]  ;;  %v320_v16 = vld [vmem:[%s3860_s10 + $0x290] sm:$0xff] }
  0x4e   : > { %831 = vmatmul.mubr.bf16.vlgmr.msra.gmra.mxu0 %v398_v40  ;;  %v295_v40 = vld [vmem:[%s3860_s10 + $0x1c8] sm:$0xff]  ;;  %v325_v17 = vld [vmem:[%s3860_s10 + $0x2b8] sm:$0xff]  ;;  %v328_v26 = vld [vmem:[%s3860_s10 + $0x2d0] sm:$0xff] }
  0x4f   : > { %992 = vmatmul.mubr.bf16.vlgmr.msra.gmra.mxu1 %v400_v44  ;;  %838 = vmatprep.mubr.bf16.mxu0 %v404_v48  ;;  %v306_v44 = vld [vmem:[%s3860_s10 + $0x220] sm:$0xff]  ;;  %v425_v46 = vpack.c.bf16 %v295_v40, %v290_v38  ;;  %v323_v15 = vld [vmem:[%s3860_s10 + $0x2a8] sm:$0xff]  ;;  %v440_v23 = vpack.c.bf16 %v325_v17, %v320_v16  ;;  %v333_v27 = vld [vmem:[%s3860_s10 + $0x2f8] sm:$0xff] }
  0x50   : > { %999 = vmatprep.mubr.bf16.mxu1 %v406_v49  ;;  %3396 = vmatpush3.bf16.msra.mxu0 %v3580_v19  ;;  %v3583_v48 = vld [vmem:[%s5201_s1 + $0x120] sm:$0xff]   ;;  %v431_v49 = vpack.c.bf16 %v306_v44, %v301_v43  ;;  %v335_v29 = vld [vmem:[%s3860_s10 + $0x308] sm:$0xff]  ;;  %v340_v40 = vld [vmem:[%s3860_s10 + $0x330] sm:$0xff] }
  0x51   : > { %3397 = vmatprep.subr.bf16.mxu0 %v3581_v31  ;;  %v334_v19 = vld [vmem:[%s3860_s10 + $0x300] sm:$0xff]  ;;  %v339_v30 = vld [vmem:[%s3860_s10 + $0x328] sm:$0xff]  ;;  %v345_v41 = vld [vmem:[%s3860_s10 + $0x358] sm:$0xff] }
  0x52   : > { %v330_v28 = vld [vmem:[%s3860_s10 + $0x2e0] sm:$0xff]  ;;  %v349_v42 = vld [vmem:[%s3860_s10 + $0x378] sm:$0xff]  ;;  %v351_v44 = vld [vmem:[%s3860_s10 + $0x388] sm:$0xff] }
  0x53   : > { %v338_v38 = vld [vmem:[%s3860_s10 + $0x320] sm:$0xff]  ;;  %v364_v55 = vld [vmem:[%s3860_s10 + $0x3f0] sm:$0xff]  ;;  %v361_v56 = vld [vmem:[%s3860_s10 + $0x3d8] sm:$0xff] }
  0x54   : > { %3398 = vmatpush3.bf16.msra.mxu0 %v3581_v31  ;;  %v344_v31 = vld [vmem:[%s3860_s10 + $0x350] sm:$0xff]  ;;  %v354_v43 = vld [vmem:[%s3860_s10 + $0x3a0] sm:$0xff]  ;;  %v365_v1 = vld [vmem:[%s3860_s10 + $0x3f8] sm:$0xff] }
  0x55   : > { %3399 = vmatprep.subr.bf16.mxu0 %v3582_v39  ;;  %v449_v36 = vpack.c.bf16 %v344_v31, %v339_v30  ;;  %v369_v2 = vld [vmem:[%s3860_s10 + $0x418] sm:$0xff]  ;;  %v374_v3 = vld [vmem:[%s3860_s10 + $0x440] sm:$0xff]  ;;  %v371_v4 = vld [vmem:[%s3860_s10 + $0x428] sm:$0xff] }
  0x56   : > { %839 = vmatmul.mubr.bf16.gmra.mxu0 %v403_v58  ;;  %v316_v58 = vld [vmem:[%s3860_s10 + $0x270] sm:$0xff]  ;;  %v381_v16 = vld [vmem:[%s3860_s10 + $0x478] sm:$0xff]  ;;  %v386_v17 = vld [vmem:[%s3860_s10 + $0x4a0] sm:$0xff] }
  0x57   : > { %1000 = vmatmul.mubr.bf16.gmra.mxu1 %v405_v59  ;;  %846 = vmatprep.mubr.bf16.mxu0 %v409_v60  ;;  %v3585_v59 = vld [vmem:[%s5201_s1 + $0x110] sm:$0xff]   ;;  %v428_v60 = vpack.c.bf16 %v303_v51, %v298_v50  ;;  %v436_v63 = vpack.c.bf16 %v316_v58, %v311_v57  ;;  %v353_v51 = vld [vmem:[%s3860_s10 + $0x398] sm:$0xff]  ;;  %v366_v57 = vld [vmem:[%s3860_s10 + $0x400] sm:$0xff] }
  0x58   : > { %1007 = vmatprep.mubr.bf16.mxu1 %v411_v61  ;;  %3400 = vmatpush3.bf16.msra.mxu0 %v3582_v39  ;;  %v430_v61 = vpack.c.bf16 %v305_v54, %v300_v53  ;;  %v343_v39 = vld [vmem:[%s3860_s10 + $0x348] sm:$0xff]  ;;  %v348_v50 = vld [vmem:[%s3860_s10 + $0x370] sm:$0xff] }
  0x59   : > { %3401 = vmatprep.subr.bf16.mxu0 %v3583_v48  ;;  %v355_v53 = vld [vmem:[%s3860_s10 + $0x3a8] sm:$0xff]  ;;  %v453_v58 = vpack.c.bf16 %v353_v51, %v348_v50  ;;  %v277_v50 = vld [vmem:[%s3860_s10 + $0x138] sm:$0xff]  ;;  %v282_v51 = vld [vmem:[%s3860_s10 + $0x160] sm:$0xff] }
  0x5a   : > { %v359_v54 = vld [vmem:[%s3860_s10 + $0x3c8] sm:$0xff] }
  0x5c   : > { %3402 = vmatpush3.bf16.msra.mxu0 %v3583_v48  ;;  %v454_v48 = vpack.c.bf16 %v354_v43, %v349_v42  ;;  %v252_v43 = vld [vmem:[%s3860_s10 + $0x70] sm:$0xff] }
  0x5d   : > { %3403 = vmatprep.subr.bf16.mxu0 %v3584_v52 }
  0x5e   : > { %847 = vmatmul.mubr.bf16.gmra.mxu0 %v408_v6  ;;  %v324_v6 = vld [vmem:[%s3860_s10 + $0x2b0] sm:$0xff] }
  0x5f   : > { %1008 = vmatmul.mubr.bf16.gmra.mxu1 %v410_v7  ;;  %854 = vmatprep.mubr.bf16.mxu0 %v414_v8  ;;  %v321_v7 = vld [vmem:[%s3860_s10 + $0x298] sm:$0xff]  ;;  %v326_v8 = vld [vmem:[%s3860_s10 + $0x2c0] sm:$0xff]  ;;  %v439_v12 = vpack.c.bf16 %v324_v6, %v319_v5  ;;  %v376_v5 = vld [vmem:[%s3860_s10 + $0x450] sm:$0xff] }
  0x60   : > { %1015 = vmatprep.mubr.bf16.mxu1 %v416_v9  ;;  %3404 = vmatpush3.bf16.msra.mxu0 %v3584_v52  ;;  %v3587_v9 = vld [vmem:[%s5201_s1 + $0x100] sm:$0xff]   ;;  %v441_v13 = vpack.c.bf16 %v326_v8, %v321_v7  ;;  %v464_v8 = vpack.c.bf16 %v374_v3, %v369_v2  ;;  %v332_v3 = vld [vmem:[%s3860_s10 + $0x2f0] sm:$0xff] }
  0x61   : > { %3405 = vmatprep.subr.bf16.mxu0 %v3585_v59  ;;  %v350_v52 = vld [vmem:[%s3860_s10 + $0x380] sm:$0xff] }
  0x64   : > { %3406 = vmatpush3.bf16.msra.mxu0 %v3585_v59  ;;  %v455_v59 = vpack.c.bf16 %v355_v53, %v350_v52  ;;  %v287_v52 = vld [vmem:[%s3860_s10 + $0x188] sm:$0xff] }
  0x65   : > { %3407 = vmatprep.subr.bf16.mxu0 %v3586_v0 }
  0x66   : > { %855 = vmatmul.mubr.bf16.gmra.mxu0 %v413_v18  ;;  %v329_v18 = vld [vmem:[%s3860_s10 + $0x2d8] sm:$0xff] }
  0x67   : > { %1016 = vmatmul.mubr.bf16.gmra.mxu1 %v415_v20  ;;  %862 = vmatprep.mubr.bf16.mxu0 %v419_v21  ;;  %v331_v20 = vld [vmem:[%s3860_s10 + $0x2e8] sm:$0xff]  ;;  %v336_v21 = vld [vmem:[%s3860_s10 + $0x310] sm:$0xff]  ;;  %v444_v24 = vpack.c.bf16 %v334_v19, %v329_v18 }
  0x68   : > { %1023 = vmatprep.mubr.bf16.mxu1 %v421_v22  ;;  %3408 = vmatpush3.bf16.msra.mxu0 %v3586_v0  ;;  %v438_v22 = vpack.c.bf16 %v323_v15, %v318_v14  ;;  %v446_v25 = vpack.c.bf16 %v336_v21, %v331_v20  ;;  %v360_v0 = vld [vmem:[%s3860_s10 + $0x3d0] sm:$0xff]  ;;  %v379_v14 = vld [vmem:[%s3860_s10 + $0x468] sm:$0xff]  ;;  %v471_v21 = vpack.c.bf16 %v386_v17, %v381_v16  ;;  %v377_v16 = vld [vmem:[%s3860_s10 + $0x458] sm:$0xff] }
  0x69   : > { %3409 = vmatprep.subr.bf16.mxu0 %v3587_v9  ;;  %v460_v7 = vpack.c.bf16 %v365_v1, %v360_v0  ;;  %v384_v15 = vld [vmem:[%s3860_s10 + $0x490] sm:$0xff]  ;;  %v327_v0 = vld [vmem:[%s3860_s10 + $0x2c8] sm:$0xff]  ;;  %v382_v17 = vld [vmem:[%s3860_s10 + $0x480] sm:$0xff] }
  0x6a   : > { %v469_v20 = vpack.c.bf16 %v384_v15, %v379_v14  ;;  %v372_v15 = vld [vmem:[%s3860_s10 + $0x430] sm:$0xff] }
  0x6c   : > { %3410 = vmatpush3.bf16.msra.mxu0 %v3587_v9  ;;  %v466_v9 = vpack.c.bf16 %v376_v5, %v371_v4  ;;  %v337_v4 = vld [vmem:[%s3860_s10 + $0x318] sm:$0xff]  ;;  %v342_v5 = vld [vmem:[%s3860_s10 + $0x340] sm:$0xff] }
  0x6e   : > { %863 = vmatmul.mubr.bf16.gmra.mxu0 %v418_v32  ;;  %v341_v32 = vld [vmem:[%s3860_s10 + $0x338] sm:$0xff] }
  0x6f   : > { %1024 = vmatmul.mubr.bf16.gmra.mxu1 %v420_v33  ;;  %870 = vmatprep.mubr.bf16.mxu0 %v424_v34  ;;  %v346_v33 = vld [vmem:[%s3860_s10 + $0x360] sm:$0xff]  ;;  %v443_v34 = vpack.c.bf16 %v333_v27, %v328_v26  ;;  %v389_v26 = vld [vmem:[%s3860_s10 + $0x4b8] sm:$0xff] }
  0x70   : > { %1031 = vmatprep.mubr.bf16.mxu1 %v426_v35  ;;  %v445_v35 = vpack.c.bf16 %v335_v29, %v330_v28  ;;  %v451_v37 = vpack.c.bf16 %v346_v33, %v341_v32  ;;  %v394_v27 = vld [vmem:[%s3860_s10 + $0x4e0] sm:$0xff]  ;;  %v391_v28 = vld [vmem:[%s3860_s10 + $0x4c8] sm:$0xff]  ;;  %v396_v29 = vld [vmem:[%s3860_s10 + $0x4f0] sm:$0xff] }
  0x71   : > { %v474_v32 = vpack.c.bf16 %v394_v27, %v389_v26  ;;  %v476_v33 = vpack.c.bf16 %v396_v29, %v391_v28 }
  0x76   : > { %871 = vmatmul.mubr.bf16.gmra.mxu0 %v423_v45  ;;  %v356_v45 = vld [vmem:[%s3860_s10 + $0x3b0] sm:$0xff] }
  0x77   : > { %1032 = vmatmul.mubr.bf16.gmra.mxu1 %v425_v46  ;;  %878 = vmatprep.mubr.bf16.mxu0 %v429_v47  ;;  %v448_v46 = vpack.c.bf16 %v343_v39, %v338_v38  ;;  %v450_v47 = vpack.c.bf16 %v345_v41, %v340_v40  ;;  %v242_v38 = vld [vmem:[%s3860_s10 + $0x20] sm:$0xff]  ;;  %v247_v39 = vld [vmem:[%s3860_s10 + $0x48] sm:$0xff] }
  0x78   : > { %1039 = vmatprep.mubr.bf16.mxu1 %v431_v49  ;;  %v456_v49 = vpack.c.bf16 %v356_v45, %v351_v44  ;;  %v402_v42 = vpack.c.bf16 %v247_v39, %v242_v38  ;;  %v257_v44 = vld [vmem:[%s3860_s10 + $0x98] sm:$0xff]  ;;  %v262_v45 = vld [vmem:[%s3860_s10 + $0xc0] sm:$0xff] }
  0x7e   : > { %879 = vmatmul.mubr.bf16.gmra.mxu0 %v428_v60  ;;  %v459_v60 = vpack.c.bf16 %v364_v55, %v359_v54  ;;  %v422_v54 = vpack.c.bf16 %v287_v52, %v282_v51  ;;  %v292_v55 = vld [vmem:[%s3860_s10 + $0x1b0] sm:$0xff] }
  0x7f   : > { %1040 = vmatmul.mubr.bf16.gmra.mxu1 %v430_v61  ;;  %886 = vmatprep.mubr.bf16.mxu0 %v434_v62  ;;  %v461_v61 = vpack.c.bf16 %v366_v57, %v361_v56  ;;  %v358_v62 = vld [vmem:[%s3860_s10 + $0x3c0] sm:$0xff]  ;;  %v297_v56 = vld [vmem:[%s3860_s10 + $0x1d8] sm:$0xff] }
  0x80   : > { %1047 = vmatprep.mubr.bf16.mxu1 %v436_v63  ;;  %v363_v63 = vld [vmem:[%s3860_s10 + $0x3e8] sm:$0xff]  ;;  %v302_v57 = vld [vmem:[%s3860_s10 + $0x200] sm:$0xff] }
  0x81   : > { %v458_v6 = vpack.c.bf16 %v363_v63, %v358_v62  ;;  %v317_v62 = vld [vmem:[%s3860_s10 + $0x278] sm:$0xff]  ;;  %v322_v63 = vld [vmem:[%s3860_s10 + $0x2a0] sm:$0xff] }
  0x82   : > { %v442_v2 = vpack.c.bf16 %v327_v0, %v322_v63 }
  0x86   : > { %887 = vmatmul.mubr.bf16.gmra.mxu0 %v433_v10  ;;  %v368_v10 = vld [vmem:[%s3860_s10 + $0x410] sm:$0xff] }
  0x87   : > { %1048 = vmatmul.mubr.bf16.gmra.mxu1 %v435_v11  ;;  %894 = vmatprep.mubr.bf16.mxu0 %v439_v12  ;;  %v373_v11 = vld [vmem:[%s3860_s10 + $0x438] sm:$0xff]  ;;  %v370_v12 = vld [vmem:[%s3860_s10 + $0x420] sm:$0xff] }
  0x88   : > { %1055 = vmatprep.mubr.bf16.mxu1 %v441_v13  ;;  %v375_v13 = vld [vmem:[%s3860_s10 + $0x448] sm:$0xff]  ;;  %v463_v18 = vpack.c.bf16 %v373_v11, %v368_v10  ;;  %v357_v10 = vld [vmem:[%s3860_s10 + $0x3b8] sm:$0xff]  ;;  %v362_v11 = vld [vmem:[%s3860_s10 + $0x3e0] sm:$0xff] }
  0x89   : > { %v465_v19 = vpack.c.bf16 %v375_v13, %v370_v12  ;;  %v367_v12 = vld [vmem:[%s3860_s10 + $0x408] sm:$0xff] }
  0x8a   : > { %v462_v14 = vpack.c.bf16 %v367_v12, %v362_v11 }
  0x8e   : > { %895 = vmatmul.mubr.bf16.gmra.mxu0 %v438_v22  ;;  %v378_v22 = vld [vmem:[%s3860_s10 + $0x460] sm:$0xff] }
  0x8f   : > { %1056 = vmatmul.mubr.bf16.gmra.mxu1 %v440_v23  ;;  %902 = vmatprep.mubr.bf16.mxu0 %v444_v24  ;;  %v383_v23 = vld [vmem:[%s3860_s10 + $0x488] sm:$0xff]  ;;  %v380_v24 = vld [vmem:[%s3860_s10 + $0x470] sm:$0xff] }
  0x90   : > { %1063 = vmatprep.mubr.bf16.mxu1 %v446_v25  ;;  %v385_v25 = vld [vmem:[%s3860_s10 + $0x498] sm:$0xff]  ;;  %v468_v30 = vpack.c.bf16 %v383_v23, %v378_v22 }
  0x91   : > { %v470_v31 = vpack.c.bf16 %v385_v25, %v380_v24  ;;  %v397_v22 = vld [vmem:[%s3860_s10 + $0x4f8] sm:$0xff] }
  0x96   : > { %903 = vmatmul.mubr.bf16.gmra.mxu0 %v443_v34  ;;  %v388_v34 = vld [vmem:[%s3860_s10 + $0x4b0] sm:$0xff] }
  0x97   : > { %1064 = vmatmul.mubr.bf16.gmra.mxu1 %v445_v35  ;;  %910 = vmatprep.mubr.bf16.mxu0 %v449_v36  ;;  %v393_v35 = vld [vmem:[%s3860_s10 + $0x4d8] sm:$0xff]  ;;  %v390_v36 = vld [vmem:[%s3860_s10 + $0x4c0] sm:$0xff] }
  0x98   : > { %1071 = vmatprep.mubr.bf16.mxu1 %v451_v37  ;;  %v395_v37 = vld [vmem:[%s3860_s10 + $0x4e8] sm:$0xff]  ;;  %v473_v40 = vpack.c.bf16 %v393_v35, %v388_v34 }
  0x99   : > { %v475_v41 = vpack.c.bf16 %v395_v37, %v390_v36 }
  0x9e   : > { %911 = vmatmul.mubr.bf16.gmra.mxu0 %v448_v46  ;;  %v267_v46 = vld [vmem:[%s3860_s10 + $0xe8] sm:$0xff] }
  0x9f   : > { %1072 = vmatmul.mubr.bf16.gmra.mxu1 %v450_v47  ;;  %918 = vmatprep.mubr.bf16.mxu0 %v454_v48  ;;  %v407_v47 = vpack.c.bf16 %v257_v44, %v252_v43  ;;  %v412_v48 = vpack.c.bf16 %v267_v46, %v262_v45 }
  0xa0   : > { %1079 = vmatprep.mubr.bf16.mxu1 %v456_v49  ;;  %v272_v49 = vld [vmem:[%s3860_s10 + $0x110] sm:$0xff] }
  0xa1   : > { %v417_v53 = vpack.c.bf16 %v277_v50, %v272_v49 }
  0xa6   : > { %919 = vmatmul.mubr.bf16.gmra.mxu0 %v453_v58  ;;  %v307_v58 = vld [vmem:[%s3860_s10 + $0x228] sm:$0xff] }
  0xa7   : > { %1080 = vmatmul.mubr.bf16.gmra.mxu1 %v455_v59  ;;  %926 = vmatprep.mubr.bf16.mxu0 %v459_v60  ;;  %v427_v59 = vpack.c.bf16 %v297_v56, %v292_v55  ;;  %v432_v60 = vpack.c.bf16 %v307_v58, %v302_v57 }
  0xa8   : > { %1087 = vmatprep.mubr.bf16.mxu1 %v461_v61  ;;  %v312_v61 = vld [vmem:[%s3860_s10 + $0x250] sm:$0xff] }
  0xa9   : > { %v437_v1 = vpack.c.bf16 %v317_v62, %v312_v61 }
  0xae   : > { %927 = vmatmul.mubr.bf16.gmra.mxu0 %v458_v6  ;;  %v347_v6 = vld [vmem:[%s3860_s10 + $0x368] sm:$0xff] }
  0xaf   : > { %1088 = vmatmul.mubr.bf16.gmra.mxu1 %v460_v7  ;;  %934 = vmatprep.mubr.bf16.mxu0 %v464_v8  ;;  %v447_v7 = vpack.c.bf16 %v337_v4, %v332_v3  ;;  %v452_v8 = vpack.c.bf16 %v347_v6, %v342_v5 }
  0xb0   : > { %1095 = vmatprep.mubr.bf16.mxu1 %v466_v9  ;;  %v352_v9 = vld [vmem:[%s3860_s10 + $0x390] sm:$0xff] }
  0xb1   : > { %v457_v13 = vpack.c.bf16 %v357_v10, %v352_v9 }
  0xb6   : > { %935 = vmatmul.mubr.bf16.gmra.mxu0 %v463_v18  ;;  %v387_v18 = vld [vmem:[%s3860_s10 + $0x4a8] sm:$0xff] }
  0xb7   : > { %1096 = vmatmul.mubr.bf16.gmra.mxu1 %v465_v19  ;;  %942 = vmatprep.mubr.bf16.mxu0 %v469_v20  ;;  %v467_v19 = vpack.c.bf16 %v377_v16, %v372_v15  ;;  %v472_v20 = vpack.c.bf16 %v387_v18, %v382_v17 }
  0xb8   : > { %1103 = vmatprep.mubr.bf16.mxu1 %v471_v21  ;;  %v392_v21 = vld [vmem:[%s3860_s10 + $0x4d0] sm:$0xff] }
  0xb9   : > { %v477_v23 = vpack.c.bf16 %v397_v22, %v392_v21 }
  0xbe   : > { %943 = vmatmul.mubr.bf16.gmra.mxu0 %v468_v30 }
  0xbf   : > { %1104 = vmatmul.mubr.bf16.gmra.mxu1 %v470_v31  ;;  %950 = vmatprep.mubr.bf16.mxu0 %v474_v32 }
  0xc0   : > { %1111 = vmatprep.mubr.bf16.mxu1 %v476_v33 }
  0xc6   : > { %951 = vmatmul.mubr.bf16.gmra.mxu0 %v473_v40 }
  0xc7   : > { %1112 = vmatmul.mubr.bf16.gmra.mxu1 %v475_v41  ;;  %3411 = vmatprep.mubr.bf16.mxu0 %v402_v42 }
  0xce   : > { %3412 = vmatmul.mubr.bf16.vlgmr.msra.gmra.mxu0 %v407_v47 }
  0xcf   : > { %3415 = vmatprep.mubr.bf16.mxu0 %v412_v48 }
  0xd6   : > { %3416 = vmatmul.mubr.bf16.gmra.mxu0 %v417_v53 }
  0xd7   : > { %3419 = vmatprep.mubr.bf16.mxu0 %v422_v54 }
  0xde   : > { %3420 = vmatmul.mubr.bf16.gmra.mxu0 %v427_v59 }
  0xdf   : > { %3423 = vmatprep.mubr.bf16.mxu0 %v432_v60 }
  0xe6   : > { %3424 = vmatmul.mubr.bf16.gmra.mxu0 %v437_v1 }
  0xe7   : > { %3427 = vmatprep.mubr.bf16.mxu0 %v442_v2 }
  0xee   : > { %3428 = vmatmul.mubr.bf16.gmra.mxu0 %v447_v7 }
  0xef   : > { %3431 = vmatprep.mubr.bf16.mxu0 %v452_v8 }
  0xf6   : > { %3432 = vmatmul.mubr.bf16.gmra.mxu0 %v457_v13 }
  0xf7   : > { %3435 = vmatprep.mubr.bf16.mxu0 %v462_v14 }
  0xfe   : > { %3436 = vmatmul.mubr.bf16.gmra.mxu0 %v467_v19 }
  0xff   : > { %3439 = vmatprep.mubr.bf16.mxu0 %v472_v20 }
 0x106   : > { %3440 = vmatmul.mubr.bf16.gmra.mxu0 %v477_v23 }
 0x10e   : > { %v3067_v24 = vpop.f32.mrf.mxu0 }
 0x10f   : > { %v3179_v25 = vpop.f32.mrf.mxu1 }
 0x110   : > { %v3068_v26 = vpop.f32.mrf.mxu0 }
 0x111   : > { %v3069_v27 = vadd.f32 %v3068_v26, %v3067_v24  ;;  %v3180_v28 = vpop.f32.mrf.mxu1 }
 0x112   : > { %v3181_v29 = vadd.f32 %v3180_v28, %v3179_v25  ;;  %v3070_v30 = vpop.f32.mrf.mxu0 }
 0x113   : > { %v3182_v31 = vpop.f32.mrf.mxu1 }
 0x114   : > { %v3071_v32 = vpop.f32.mrf.mxu0  ;;  %v4146_v33 = vadd.f32 %v3181_v29, %v3069_v27 }
 0x115   : > { %v3072_v34 = vadd.f32 %v3071_v32, %v3070_v30  ;;  %v3183_v35 = vpop.f32.mrf.mxu1 }
 0x116   : > { %v3184_v36 = vadd.f32 %v3183_v35, %v3182_v31  ;;  %v3073_v37 = vpop.f32.mrf.mxu0 }
 0x117   : > { %v3185_v38 = vpop.f32.mrf.mxu1 }
 0x118   : > { %v3074_v39 = vpop.f32.mrf.mxu0  ;;  %v4148_v40 = vadd.f32 %v3184_v36, %v3072_v34 }
 0x119   : > { %v3075_v41 = vadd.f32 %v3074_v39, %v3073_v37  ;;  %v3186_v42 = vpop.f32.mrf.mxu1 }
 0x11a   : > { %v3187_v43 = vadd.f32 %v3186_v42, %v3185_v38  ;;  %v3076_v44 = vpop.f32.mrf.mxu0 }
 0x11b   : > { %v3188_v45 = vpop.f32.mrf.mxu1 }
 0x11c   : > { %v3077_v46 = vpop.f32.mrf.mxu0  ;;  %v4150_v47 = vadd.f32 %v3187_v43, %v3075_v41 }
 0x11d   : > { %v3078_v48 = vadd.f32 %v3077_v46, %v3076_v44  ;;  %v3189_v49 = vpop.f32.mrf.mxu1 }
 0x11e   : > { %v3190_v50 = vadd.f32 %v3189_v49, %v3188_v45  ;;  %v3079_v51 = vpop.f32.mrf.mxu0 }
 0x11f   : > { %v3191_v52 = vpop.f32.mrf.mxu1 }
 0x120   : > { %v3080_v53 = vpop.f32.mrf.mxu0  ;;  %v4152_v54 = vadd.f32 %v3190_v50, %v3078_v48 }
 0x121   : > { %v3081_v55 = vadd.f32 %v3080_v53, %v3079_v51  ;;  %v3192_v56 = vpop.f32.mrf.mxu1 }
 0x122   : > { %v3193_v57 = vadd.f32 %v3192_v56, %v3191_v52  ;;  %v3082_v58 = vpop.f32.mrf.mxu0 }
 0x123   : > { %v3194_v59 = vpop.f32.mrf.mxu1 }
 0x124   : > { %v3083_v60 = vpop.f32.mrf.mxu0  ;;  %v4154_v61 = vadd.f32 %v3193_v57, %v3081_v55 }
 0x125   : > { %v3084_v62 = vadd.f32 %v3083_v60, %v3082_v58  ;;  %v3195_v63 = vpop.f32.mrf.mxu1 }
 0x126   : > { %v3196_v0 = vadd.f32 %v3195_v63, %v3194_v59  ;;  %v3085_v1 = vpop.f32.mrf.mxu0 }
 0x127   : > { %v3197_v2 = vpop.f32.mrf.mxu1 }
 0x128   : > { %v3086_v3 = vpop.f32.mrf.mxu0  ;;  %v4156_v4 = vadd.f32 %v3196_v0, %v3084_v62 }
 0x129   : > { %v3087_v5 = vadd.f32 %v3086_v3, %v3085_v1  ;;  %v3198_v6 = vpop.f32.mrf.mxu1 }
 0x12a   : > { %v3199_v7 = vadd.f32 %v3198_v6, %v3197_v2  ;;  %v3088_v8 = vpop.f32.mrf.mxu0 }
 0x12b   : > { %v3200_v9 = vpop.f32.mrf.mxu1 }
 0x12c   : > { %v3089_v10 = vpop.f32.mrf.mxu0  ;;  %v4158_v11 = vadd.f32 %v3199_v7, %v3087_v5 }
 0x12d   : > { %v3090_v12 = vadd.f32 %v3089_v10, %v3088_v8  ;;  %v3201_v13 = vpop.f32.mrf.mxu1 }
 0x12e   : > { %v3202_v14 = vadd.f32 %v3201_v13, %v3200_v9  ;;  %v3091_v15 = vpop.f32.mrf.mxu0 }
 0x12f   : > { %v3203_v16 = vpop.f32.mrf.mxu1 }
 0x130   : > { %v3092_v17 = vpop.f32.mrf.mxu0  ;;  %v4160_v18 = vadd.f32 %v3202_v14, %v3090_v12 }
 0x131   : > { %v3093_v19 = vadd.f32 %v3092_v17, %v3091_v15  ;;  %v3204_v20 = vpop.f32.mrf.mxu1 }
 0x132   : > { %v3205_v21 = vadd.f32 %v3204_v20, %v3203_v16  ;;  %v3094_v22 = vpop.f32.mrf.mxu0 }
 0x133   : > { %v3206_v23 = vpop.f32.mrf.mxu1 }
 0x134   : > { %v3095_v24 = vpop.f32.mrf.mxu0  ;;  %v4162_v25 = vadd.f32 %v3205_v21, %v3093_v19 }
 0x135   : > { %v3096_v26 = vadd.f32 %v3095_v24, %v3094_v22  ;;  %v3207_v27 = vpop.f32.mrf.mxu1 }
 0x136   : > { %v3208_v28 = vadd.f32 %v3207_v27, %v3206_v23  ;;  %v3097_v29 = vpop.f32.mrf.mxu0 }
 0x137   : > { %v3209_v30 = vpop.f32.mrf.mxu1 }
 0x138   : > { %v3098_v31 = vpop.f32.mrf.mxu0  ;;  %v4164_v32 = vadd.f32 %v3208_v28, %v3096_v26 }
 0x139   : > { %v3099_v34 = vadd.f32 %v3098_v31, %v3097_v29  ;;  %v3210_v35 = vpop.f32.mrf.mxu1 }
 0x13a   : > { %v3211_v36 = vadd.f32 %v3210_v35, %v3209_v30  ;;  %v3100_v37 = vpop.f32.mrf.mxu0 }
 0x13b   : > { %v3212_v38 = vpop.f32.mrf.mxu1 }
 0x13c   : > { %v3101_v39 = vpop.f32.mrf.mxu0  ;;  %v4166_v41 = vadd.f32 %v3211_v36, %v3099_v34 }
 0x13d   : > { %v3102_v42 = vadd.f32 %v3101_v39, %v3100_v37  ;;  %v3213_v43 = vpop.f32.mrf.mxu1 }
 0x13e   : > { %v3214_v44 = vadd.f32 %v3213_v43, %v3212_v38  ;;  %v3103_v45 = vpop.f32.mrf.mxu0  ;;  %v1379_v43 = vld [vmem:[%s5203_s3 + $0x10] sm:$0xff] }
 0x13f   : > { %v3215_v46 = vpop.f32.mrf.mxu1 }
 0x140   : > { %v3104_v48 = vpop.f32.mrf.mxu0  ;;  %v4168_v49 = vadd.f32 %v3214_v44, %v3102_v42  ;;  %v3741_v42 = vmov 0   ;;  %v1377_v44 = vld [vmem:[%s5203_s3] sm:$0xff] }
 0x141   : > { %v3105_v50 = vadd.f32 %v3104_v48, %v3103_v45  ;;  %v3216_v51 = vpop.f32.mrf.mxu1  ;;  %3547 = vset.pattern.permute.xlu1 %v3741_v42  ;;  %3546 = vset.pattern.permute.xlu0 %v3741_v42 }
 0x142   : > { %v3217_v52 = vadd.f32 %v3216_v51, %v3215_v46  ;;  %v3106_v53 = vpop.f32.mrf.mxu0  ;;  %1469 = vperm.xlu1 %3547, %v1379_v43   ;;  %1459 = vperm.xlu0 %3546, %v1377_v44   ;;  %v1390_v43 = vld [vmem:[%s5203_s3 + $0x68] sm:$0xff]  ;;  %v1389_v44 = vld [vmem:[%s5203_s3 + $0x60] sm:$0xff] }
 0x143   : > { %v3218_v55 = vpop.f32.mrf.mxu1 }
 0x144   : > { %v3107_v56 = vpop.f32.mrf.mxu0  ;;  %v4170_v57 = vadd.f32 %v3217_v52, %v3105_v50 }
 0x145   : > { %v3108_v58 = vadd.f32 %v3107_v56, %v3106_v53  ;;  %v3219_v59 = vpop.f32.mrf.mxu1  ;;  %v1378_v56 = vld [vmem:[%s5203_s3 + $0x8] sm:$0xff] }
 0x146   : > { %v3220_v60 = vadd.f32 %v3219_v59, %v3218_v55  ;;  %v3109_v62 = vpop.f32.mrf.mxu0  ;;  %v1380_v55 = vld [vmem:[%s5203_s3 + $0x18] sm:$0xff]  ;;  %1464 = vperm.xlu0 %3546, %v1378_v56  }
 0x147   : > { %v3221_v63 = vpop.f32.mrf.mxu1  ;;  %1474 = vperm.xlu1 %3547, %v1380_v55  }
 0x148   : > { %v3110_v0 = vpop.f32.mrf.mxu0  ;;  %v4172_v1 = vadd.f32 %v3220_v60, %v3108_v58 }
 0x149   : > { %v3111_v2 = vadd.f32 %v3110_v0, %v3109_v62  ;;  %v3222_v3 = vpop.f32.mrf.mxu1 }
 0x14a   : > { %v3223_v5 = vadd.f32 %v3222_v3, %v3221_v63  ;;  %v3112_v6 = vpop.f32.mrf.mxu0  ;;  %v1382_v3 = vld [vmem:[%s5203_s3 + $0x28] sm:$0xff] }
 0x14b   : > { %v3224_v7 = vpop.f32.mrf.mxu1  ;;  %1484 = vperm.xlu1 %3547, %v1382_v3   ;;  %v1396_v3 = vld [vmem:[%s5203_s3 + $0x98] sm:$0xff] }
 0x14c   : > { %v3113_v8 = vpop.f32.mrf.mxu0  ;;  %v4174_v9 = vadd.f32 %v3223_v5, %v3111_v2  ;;  %v1381_v5 = vld [vmem:[%s5203_s3 + $0x20] sm:$0xff] }
 0x14d   : > { %v3114_v10 = vadd.f32 %v3113_v8, %v3112_v6  ;;  %v3225_v12 = vpop.f32.mrf.mxu1  ;;  %1479 = vperm.xlu0 %3546, %v1381_v5   ;;  %v1395_v5 = vld [vmem:[%s5203_s3 + $0x90] sm:$0xff] }
 0x14e   : > { %v3226_v13 = vadd.f32 %v3225_v12, %v3224_v7  ;;  %v3115_v14 = vpop.f32.mrf.mxu0 }
 0x14f   : > { %v3227_v15 = vpop.f32.mrf.mxu1 }
 0x150   : > { %v3116_v16 = vpop.f32.mrf.mxu0  ;;  %v4176_v17 = vadd.f32 %v3226_v13, %v3114_v10 }
 0x151   : > { %v3117_v19 = vadd.f32 %v3116_v16, %v3115_v14  ;;  %v3228_v20 = vpop.f32.mrf.mxu1  ;;  %v1383_v16 = vld [vmem:[%s5203_s3 + $0x30] sm:$0xff] }
 0x152   : > { %v3229_v21 = vadd.f32 %v3228_v20, %v3227_v15  ;;  %v3118_v22 = vpop.f32.mrf.mxu0  ;;  %v1384_v15 = vld [vmem:[%s5203_s3 + $0x38] sm:$0xff]  ;;  %1489 = vperm.xlu0 %3546, %v1383_v16  }
 0x153   : > { %v3230_v23 = vpop.f32.mrf.mxu1  ;;  %1494 = vperm.xlu1 %3547, %v1384_v15  }
 0x154   : > { %v3119_v24 = vpop.f32.mrf.mxu0  ;;  %v4178_v26 = vadd.f32 %v3229_v21, %v3117_v19 }
 0x155   : > { %v3120_v27 = vadd.f32 %v3119_v24, %v3118_v22  ;;  %v3231_v28 = vpop.f32.mrf.mxu1 }
 0x156   : > { %v3232_v29 = vadd.f32 %v3231_v28, %v3230_v23  ;;  %v3121_v30 = vpop.f32.mrf.mxu0  ;;  %v1386_v28 = vld [vmem:[%s5203_s3 + $0x48] sm:$0xff] }
 0x157   : > { %v3233_v31 = vpop.f32.mrf.mxu1  ;;  %1504 = vperm.xlu1 %3547, %v1386_v28   ;;  %v4293_v28 = vld [vmem:[%s5202_s2] sm:$0xff]  }
 0x158   : > { %v3122_v34 = vpop.f32.mrf.mxu0  ;;  %v4180_v35 = vadd.f32 %v3232_v29, %v3120_v27  ;;  %v1385_v29 = vld [vmem:[%s5203_s3 + $0x40] sm:$0xff]  ;;  %3315 = vmatprep.mubr.msk.bf16.mxu0 %vm2057_vm0, %v4293_v28 }
 0x159   : > { %v3123_v36 = vadd.f32 %v3122_v34, %v3121_v30  ;;  %v3234_v37 = vpop.f32.mrf.mxu1  ;;  %1499 = vperm.xlu0 %3546, %v1385_v29   ;;  %v4298_v29 = vld [vmem:[%s5202_s2 + $0x80] sm:$0xff]  }
 0x15a   : > { %v3235_v38 = vadd.f32 %v3234_v37, %v3233_v31  ;;  %v3124_v39 = vpop.f32.mrf.mxu0  ;;  %v1387_v37 = vld [vmem:[%s5203_s3 + $0x50] sm:$0xff]  ;;  %3347 = vmatprep.mubr.msk.bf16.mxu1 %vm2057_vm0, %v4298_v29 }
 0x15b   : > { %v3236_v45 = vpop.f32.mrf.mxu1 }
 0x15c   : > { %v3125_v46 = vpop.f32.mrf.mxu0  ;;  %v4188_v48 = vadd.f32 %v3235_v38, %v3123_v36  ;;  %v1388_v36 = vld [vmem:[%s5203_s3 + $0x58] sm:$0xff] }
 0x15d   : > { %v3126_v50 = vadd.f32 %v3125_v46, %v3124_v39  ;;  %v3237_v51 = vpop.f32.mrf.mxu1  ;;  %1514 = vperm.xlu1 %3547, %v1388_v36   ;;  %1509 = vperm.xlu0 %3546, %v1387_v37   ;;  %v1402_v37 = vld [vmem:[%s5203_s3 + $0xc8] sm:$0xff] }
 0x15e   : > { %v3238_v52 = vadd.f32 %v3237_v51, %v3236_v45  ;;  %v3127_v53 = vpop.f32.mrf.mxu0  ;;  %v1392_v51 = vld [vmem:[%s5203_s3 + $0x78] sm:$0xff] }
 0x15f   : > { %v3239_v58 = vpop.f32.mrf.mxu1 }
 0x160   : > { %v3128_v59 = vpop.f32.mrf.mxu0  ;;  %v4196_v60 = vadd.f32 %v3238_v52, %v3126_v50  ;;  %v1391_v52 = vld [vmem:[%s5203_s3 + $0x70] sm:$0xff] }
 0x161   : > { %v3129_v62 = vadd.f32 %v3128_v59, %v3127_v53  ;;  %v3240_v63 = vpop.f32.mrf.mxu1  ;;  %1524 = vperm.xlu1 %3547, %v1390_v43   ;;  %1519 = vperm.xlu0 %3546, %v1389_v44   ;;  %v1393_v59 = vld [vmem:[%s5203_s3 + $0x80] sm:$0xff] }
 0x162   : > { %v3241_v0 = vadd.f32 %v3240_v63, %v3239_v58  ;;  %v3130_v2 = vpop.f32.mrf.mxu0  ;;  %v1394_v58 = vld [vmem:[%s5203_s3 + $0x88] sm:$0xff] }
 0x163   : > { %v3242_v6 = vpop.f32.mrf.mxu1 }
 0x164   : > { %v3131_v7 = vpop.f32.mrf.mxu0  ;;  %v4204_v8 = vadd.f32 %v3241_v0, %v3129_v62 }
 0x165   : > { %v3132_v10 = vadd.f32 %v3131_v7, %v3130_v2  ;;  %v3243_v12 = vpop.f32.mrf.mxu1  ;;  %1534 = vperm.xlu1 %3547, %v1392_v51   ;;  %1529 = vperm.xlu0 %3546, %v1391_v52  }
 0x166   : > { %v3244_v13 = vadd.f32 %v3243_v12, %v3242_v6  ;;  %v3133_v14 = vpop.f32.mrf.mxu0 }
 0x167   : > { %v3245_v19 = vpop.f32.mrf.mxu1 }
 0x168   : > { %v3134_v20 = vpop.f32.mrf.mxu0  ;;  %v4212_v21 = vadd.f32 %v3244_v13, %v3132_v10  ;;  %v1398_v13 = vld [vmem:[%s5203_s3 + $0xa8] sm:$0xff] }
 0x169   : > { %v3135_v22 = vadd.f32 %v3134_v20, %v3133_v14  ;;  %v3246_v23 = vpop.f32.mrf.mxu1  ;;  %1544 = vperm.xlu1 %3547, %v1394_v58   ;;  %1539 = vperm.xlu0 %3546, %v1393_v59   ;;  %v1397_v14 = vld [vmem:[%s5203_s3 + $0xa0] sm:$0xff]  ;;  %v1406_v59 = vld [vmem:[%s5203_s3 + $0xe8] sm:$0xff] }
 0x16a   : > { %v3247_v24 = vadd.f32 %v3246_v23, %v3245_v19  ;;  %v4214_v27 = vpop.f32.mrf.mxu0  ;;  %v1399_v23 = vld [vmem:[%s5203_s3 + $0xb0] sm:$0xff] }
 0x16b   : > { %v4258_v0 = vpop.f32.mrf.mxu1 }
 0x16c   : > { %v4222_v30 = vpop.f32.mrf.mxu0  ;;  %v4224_v31 = vadd.f32 %v3247_v24, %v3135_v22  ;;  %v1400_v22 = vld [vmem:[%s5203_s3 + $0xb8] sm:$0xff] }
 0x16d   : > { %1554 = vperm.xlu1 %3547, %v1396_v3   ;;  %1549 = vperm.xlu0 %3546, %v1395_v5   ;;  %v4268_v10 = vpop.f32.mrf.mxu1 }
 0x16e   : > { %v3139_v34 = vpop.f32.mrf.mxu0 }
 0x16f   : > { %v4278_v19 = vpop.f32.mrf.mxu1 }
 0x170   : > { %v3140_v38 = vpop.f32.mrf.mxu0 }
 0x171   : > { %v4232_v39 = vadd.f32 %v3140_v38, %v3139_v34  ;;  %1564 = vperm.xlu1 %3547, %v1398_v13   ;;  %1559 = vperm.xlu0 %3546, %v1397_v14   ;;  %v4300_v34 = vpop.f32.mrf.mxu1  ;;  %v1401_v38 = vld [vmem:[%s5203_s3 + $0xc0] sm:$0xff] }
 0x172   : > { %v3142_v42 = vpop.f32.mrf.mxu0 }
 0x173   : > { %v4316_v43 = vpop.f32.mrf.mxu1 }
 0x174   : > { %v3143_v45 = vpop.f32.mrf.mxu0 }
 0x175   : > { %v4240_v46 = vadd.f32 %v3143_v45, %v3142_v42  ;;  %1574 = vperm.xlu1 %3547, %v1400_v22   ;;  %1569 = vperm.xlu0 %3546, %v1399_v23   ;;  %v1404_v45 = vld [vmem:[%s5203_s3 + $0xd8] sm:$0xff] }
 0x176   : > { %v3145_v50 = vpop.f32.mrf.mxu0 }
 0x178   : > { %v3146_v53 = vpop.f32.mrf.mxu0 }
 0x179   : > { %v4248_v55 = vadd.f32 %v3146_v53, %v3145_v50  ;;  %1584 = vperm.xlu1 %3547, %v1402_v37   ;;  %1579 = vperm.xlu0 %3546, %v1401_v38   ;;  %v1403_v50 = vld [vmem:[%s5203_s3 + $0xd0] sm:$0xff]  ;;  %v1410_v37 = vld [vmem:[%s5203_s3 + $0x108] sm:$0xff]  ;;  %v1409_v38 = vld [vmem:[%s5203_s3 + $0x100] sm:$0xff] }
 0x17a   : > { %v3148_v56 = vpop.f32.mrf.mxu0 }
 0x17c   : > { %v3149_v62 = vpop.f32.mrf.mxu0 }
 0x17d   : > { %v4256_v63 = vadd.f32 %v3149_v62, %v3148_v56  ;;  %1594 = vperm.xlu1 %3547, %v1404_v45   ;;  %1589 = vperm.xlu0 %3546, %v1403_v50   ;;  %v4330_v56 = vpop.f32.mrf.mxu1  ;;  %v1405_v62 = vld [vmem:[%s5203_s3 + $0xe0] sm:$0xff] }
 0x17e   : > { %v3151_v2 = vpop.f32.mrf.mxu0 }
 0x17f   : > { %v4346_v5 = vpop.f32.mrf.mxu1 }
 0x180   : > { %v3152_v6 = vpop.f32.mrf.mxu0 }
 0x181   : > { %v4266_v7 = vadd.f32 %v3152_v6, %v3151_v2  ;;  %1604 = vperm.xlu1 %3547, %v1406_v59   ;;  %1599 = vperm.xlu0 %3546, %v1405_v62   ;;  %v4362_v22 = vpop.f32.mrf.mxu1 }
 0x182   : > { %v3154_v12 = vpop.f32.mrf.mxu0 }
 0x183   : > { %v4378_v50 = vpop.f32.mrf.mxu1 }
 0x184   : > { %v3155_v15 = vpop.f32.mrf.mxu0 }
 0x185   : > { %v4276_v16 = vadd.f32 %v3155_v15, %v3154_v12  ;;  %v1408_v12 = vld [vmem:[%s5203_s3 + $0xf8] sm:$0xff] }
 0x186   : > { %v4280_v20 = vpop.f32.mrf.mxu0  ;;  %1614 = vperm.xlu1 %3547, %v1408_v12   ;;  %v1414_v12 = vld [vmem:[%s5203_s3 + $0x128] sm:$0xff] }
 0x188   : > { %v4288_v24 = vpop.f32.mrf.mxu0 }
 0x18a   : > { %v4302_v36 = vpop.f32.mrf.mxu0  ;;  %1624 = vperm.xlu1 %3547, %v1410_v37  }
 0x18c   : > { %v4314_v42 = vpop.f32.mrf.mxu0 }
 0x18e   : > { %v3413_v44 = vpop.f32.mrf.mxu0 }
 0x18f   : > { %v4325_v51 = vadd.f32 %v3413_v44, %v4150_v47 }
 0x190   : > { %v1154_v52 = vpop.f32.mrf.mxu0 }
 0x191   : > { %v4328_v53 = vadd.f32 %v1154_v52, %v4146_v33 }
 0x192   : > { %v3414_v58 = vpop.f32.mrf.mxu0 }
 0x193   : > { %v4339_v47 = vadd.f32 %v3414_v58, %v4152_v54  ;;  %v1407_v54 = vld [vmem:[%s5203_s3 + $0xf0] sm:$0xff]  ;;  %v1412_v58 = vld [vmem:[%s5203_s3 + $0x118] sm:$0xff] }
 0x194   : > { %v1157_v2 = vpop.f32.mrf.mxu0  ;;  %1609 = vperm.xlu0 %3546, %v1407_v54   ;;  %1634 = vperm.xlu1 %3547, %v1412_v58   ;;  %v1413_v54 = vld [vmem:[%s5203_s3 + $0x120] sm:$0xff] }
 0x195   : > { %v4344_v3 = vadd.f32 %v1157_v2, %v4148_v40  ;;  %v4391_v2 = vpop.f32.mrf.mxu1 }
 0x196   : > { %v3417_v6 = vpop.f32.mrf.mxu0 }
 0x197   : > { %v4357_v14 = vadd.f32 %v3417_v6, %v4158_v11 }
 0x198   : > { %v1170_v40 = vpop.f32.mrf.mxu0  ;;  %1619 = vperm.xlu0 %3546, %v1409_v38   ;;  %1644 = vperm.xlu1 %3547, %v1414_v12   ;;  %v1417_v12 = vld [vmem:[%s5203_s3 + $0x140] sm:$0xff] }
 0x199   : > { %v4360_v15 = vadd.f32 %v1170_v40, %v4154_v61 }
 0x19a   : > { %v3418_v23 = vpop.f32.mrf.mxu0 }
 0x19b   : > { %v4371_v11 = vadd.f32 %v3418_v23, %v4160_v18  ;;  %v1411_v18 = vld [vmem:[%s5203_s3 + $0x110] sm:$0xff] }
 0x19c   : > { %v1173_v44 = vpop.f32.mrf.mxu0  ;;  %1629 = vperm.xlu0 %3546, %v1411_v18  }
 0x19d   : > { %v4376_v45 = vadd.f32 %v1173_v44, %v4156_v4  ;;  %v4410_v44 = vpop.f32.mrf.mxu1 }
 0x19e   : > { %v3421_v52 = vpop.f32.mrf.mxu0 }
 0x19f   : > { %v4400_v40 = vadd.f32 %v3421_v52, %v4166_v41  ;;  %v1416_v41 = vld [vmem:[%s5203_s3 + $0x138] sm:$0xff] }
 0x1a0   : > { %v1186_v62 = vpop.f32.mrf.mxu0  ;;  %1639 = vperm.xlu0 %3546, %v1413_v54   ;;  %1654 = vperm.xlu1 %3547, %v1416_v41  }
 0x1a1   : > { %v4389_v4 = vadd.f32 %v1186_v62, %v4162_v25  ;;  %v4420_v62 = vpop.f32.mrf.mxu1 }
 0x1a2   : > { %v3422_v6 = vpop.f32.mrf.mxu0 }
 0x1a3   : > { %v4403_v23 = vadd.f32 %v3422_v6, %v4168_v49  ;;  %v1415_v49 = vld [vmem:[%s5203_s3 + $0x130] sm:$0xff]  ;;  %v1418_v6 = vld [vmem:[%s5203_s3 + $0x148] sm:$0xff]  ;;  %v4442_v59 = vpop.f32.mrf.mxu1 }
 0x1a4   : > { %v1189_v25 = vpop.f32.mrf.mxu0  ;;  %1649 = vperm.xlu0 %3546, %v1415_v49   ;;  %1664 = vperm.xlu1 %3547, %v1418_v6  }
 0x1a5   : > { %v4408_v38 = vadd.f32 %v1189_v25, %v4164_v32 }
 0x1a6   : > { %v3425_v58 = vpop.f32.mrf.mxu0 }
 0x1a7   : > { %v4429_v54 = vadd.f32 %v3425_v58, %v4174_v9  ;;  %v1420_v9 = vld [vmem:[%s5203_s3 + $0x158] sm:$0xff] }
 0x1a8   : > { %v1202_v18 = vpop.f32.mrf.mxu0  ;;  %1659 = vperm.xlu0 %3546, %v1417_v12   ;;  %1674 = vperm.xlu1 %3547, %v1420_v9   ;;  %v1422_v12 = vld [vmem:[%s5203_s3 + $0x168] sm:$0xff] }
 0x1a9   : > { %v4435_v49 = vadd.f32 %v1202_v18, %v4170_v57  ;;  %v1424_v57 = vld [vmem:[%s5203_s3 + $0x178] sm:$0xff] }
 0x1aa   : > { %v3426_v32 = vpop.f32.mrf.mxu0 }
 0x1ab   : > { %v4432_v25 = vadd.f32 %v3426_v32, %v4176_v17  ;;  %v1419_v17 = vld [vmem:[%s5203_s3 + $0x150] sm:$0xff]  ;;  %v4454_v32 = vpop.f32.mrf.mxu1 }
 0x1ac   : > { %v1205_v41 = vpop.f32.mrf.mxu0  ;;  %1669 = vperm.xlu0 %3546, %v1419_v17   ;;  %1684 = vperm.xlu1 %3547, %v1422_v12  }
 0x1ad   : > { %v1368_v13 = vpack.c.bf16 %v4432_v25, %v4429_v54  ;;  %v4440_v33 = vadd.f32 %v1205_v41, %v4172_v1  ;;  %v1421_v41 = vld [vmem:[%s5203_s3 + $0x160] sm:$0xff] }
 0x1ae   : > { %v3429_v61 = vpop.f32.mrf.mxu0  ;;  %v1437_v54 = vld [vmem:[%s5203_s3 + $0x1e0] sm:$0xff] }
 0x1af   : > { %v1227_v58 = vadd.f32 %v3429_v61, %v4188_v48  ;;  %v3138_v61 = vadd.f32 %v4222_v30, %v4214_v27  ;;  %v5210_v25 = vpack.c.bf16 %v4440_v33, %v4435_v49  ;;  %v1442_v33 = vld [vmem:[%s5203_s3 + $0x208] sm:$0xff]  ;;  %v1441_v49 = vld [vmem:[%s5203_s3 + $0x200] sm:$0xff] }
 0x1b0   : > { %v1218_v1 = vpop.f32.mrf.mxu0  ;;  %1679 = vperm.xlu0 %3546, %v1421_v41   ;;  %1694 = vperm.xlu1 %3547, %v1424_v57   ;;  %v3259_v57 = vadd.f32 %v4362_v22, %v4346_v5  ;;  %v3262_v41 = vadd.f32 %v4391_v2, %v4378_v50  ;;  %v1427_v5 = vld [vmem:[%s5203_s3 + $0x190] sm:$0xff] }
 0x1b1   : > { %v1219_v18 = vadd.f32 %v1218_v1, %v4178_v26  ;;  %v3250_v26 = vadd.f32 %v4268_v10, %v4258_v0  ;;  %v3269_v1 = vpop.f32.mrf.mxu1 }
 0x1b2   : > { %v3430_v6 = vpop.f32.mrf.mxu0 }
 0x1b3   : > { %v1230_v52 = vadd.f32 %v3430_v6, %v4196_v60  ;;  %v1423_v60 = vld [vmem:[%s5203_s3 + $0x170] sm:$0xff]  ;;  %v1085_v30 = vadd.f32 %v3250_v26, %v3138_v61  ;;  %v3270_v0 = vpop.f32.mrf.mxu1 }
 0x1b4   : > { %v1221_v48 = vpop.f32.mrf.mxu0  ;;  %1689 = vperm.xlu0 %3546, %v1423_v60   ;;  %v1428_v60 = vld [vmem:[%s5203_s3 + $0x198] sm:$0xff] }
 0x1b5   : > { %v4467_v9 = vpack.c.bf16 %v1230_v52, %v1227_v58  ;;  %v1222_v17 = vadd.f32 %v1221_v48, %v4180_v35  ;;  %v1426_v35 = vld [vmem:[%s5203_s3 + $0x188] sm:$0xff]  ;;  %v1425_v52 = vld [vmem:[%s5203_s3 + $0x180] sm:$0xff] }
 0x1b6   : > { %v3433_v37 = vpop.f32.mrf.mxu0  ;;  %1704 = vperm.xlu1 %3547, %v1426_v35  }
 0x1b7   : > { %v4476_v6 = vpack.c.bf16 %v1222_v17, %v1219_v18  ;;  %v1243_v58 = vadd.f32 %v3433_v37, %v4224_v31  ;;  %v3253_v17 = vadd.f32 %v4300_v34, %v4278_v19  ;;  %v3272_v31 = vpop.f32.mrf.mxu1  ;;  %v1098_v19 = vadd.f32 %v3259_v57, %v4248_v55 }
 0x1b8   : > { %v1234_v27 = vpop.f32.mrf.mxu0  ;;  %1699 = vperm.xlu0 %3546, %v1425_v52   ;;  %v1101_v34 = vadd.f32 %v3262_v41, %v4256_v63  ;;  %v3159_v55 = vadd.f32 %v4288_v24, %v4280_v20  ;;  %v3271_v63 = vadd.f32 %v3270_v0, %v3269_v1  ;;  %v3265_v41 = vadd.f32 %v4420_v62, %v4410_v44  ;;  %v1431_v20 = vld [vmem:[%s5203_s3 + $0x1b0] sm:$0xff] }
 0x1b9   : > { %v1235_v48 = vadd.f32 %v1234_v27, %v4204_v8  ;;  %v3256_v8 = vadd.f32 %v4330_v56, %v4316_v43  ;;  %v3273_v50 = vpop.f32.mrf.mxu1  ;;  %v1090_v2 = vadd.f32 %v3253_v17, %v4232_v39  ;;  %v1429_v43 = vld [vmem:[%s5203_s3 + $0x1a0] sm:$0xff]  ;;  %v3162_v39 = vadd.f32 %v4314_v42, %v4302_v36 }
 0x1ba   : > { %v3434_v10 = vpop.f32.mrf.mxu0  ;;  %1714 = vperm.xlu1 %3547, %v1428_v60   ;;  %v3268_v24 = vadd.f32 %v4454_v32, %v4442_v59  ;;  %v1114_v1 = vadd.f32 %v3271_v63, %v3159_v55  ;;  %v1106_v44 = vadd.f32 %v3265_v41, %v4266_v7  ;;  %v1433_v17 = vld [vmem:[%s5203_s3 + $0x1c0] sm:$0xff]  ;;  %v1448_v55 = vld [vmem:[%s5203_s3 + $0x238] sm:$0xff]  ;;  %v1447_v63 = vld [vmem:[%s5203_s3 + $0x230] sm:$0xff]  ;;  %v5216_v41 = vpack.c.bf16 %v4344_v3, %v4328_v53 }
 0x1bb   : > { %v1246_v12 = vadd.f32 %v3434_v10, %v1085_v30  ;;  %v1430_v30 = vld [vmem:[%s5203_s3 + $0x1a8] sm:$0xff]  ;;  %v1093_v35 = vadd.f32 %v3256_v8, %v4240_v46  ;;  %v1432_v46 = vld [vmem:[%s5203_s3 + $0x1b8] sm:$0xff]  ;;  %v3592_v53 = vld [vmem:[%s5202_s2 + $0x10] sm:$0xff]  }
 0x1bc   : > { %v1237_v18 = vpop.f32.mrf.mxu0  ;;  %1709 = vperm.xlu0 %3546, %v1427_v5   ;;  %v1109_v59 = vadd.f32 %v3268_v24, %v4276_v16  ;;  %v1436_v16 = vld [vmem:[%s5203_s3 + $0x1d8] sm:$0xff]  ;;  %v3593_v3 = vld [vmem:[%s5202_s2 + $0x90] sm:$0xff]  }
 0x1bd   : > { %v4490_v61 = vpack.c.bf16 %v1246_v12, %v1243_v58  ;;  %v1238_v26 = vadd.f32 %v1237_v18, %v4212_v21  ;;  %v3274_v58 = vadd.f32 %v3273_v50, %v3272_v31  ;;  %v1440_v50 = vld [vmem:[%s5203_s3 + $0x1f8] sm:$0xff]  ;;  %v3600_v24 = vld [vmem:[%s5202_s2 + $0x30] sm:$0xff]  }
 0x1be   : > { %v3437_v37 = vpop.f32.mrf.mxu0  ;;  %1724 = vperm.xlu1 %3547, %v1430_v30  }
 0x1bf   : > { %v4503_v22 = vpack.c.bf16 %v1238_v26, %v1235_v48  ;;  %v1259_v56 = vadd.f32 %v3437_v37, %v1098_v19  ;;  %v1117_v0 = vadd.f32 %v3274_v58, %v3162_v39  ;;  %v1434_v26 = vld [vmem:[%s5203_s3 + $0x1c8] sm:$0xff]  ;;  %v1435_v19 = vld [vmem:[%s5203_s3 + $0x1d0] sm:$0xff]  ;;  %v5213_v39 = vpack.c.bf16 %v4371_v11, %v4357_v14  ;;  %v1453_v11 = vld [vmem:[%s5203_s3 + $0x260] sm:$0xff] }
 0x1c0   : > { %v1250_v21 = vpop.f32.mrf.mxu0  ;;  %1719 = vperm.xlu0 %3546, %v1429_v43   ;;  %v1444_v43 = vld [vmem:[%s5203_s3 + $0x218] sm:$0xff]  ;;  %v1451_v58 = vld [vmem:[%s5203_s3 + $0x250] sm:$0xff]  ;;  %v1454_v14 = vld [vmem:[%s5203_s3 + $0x268] sm:$0xff] }
 0x1c1   : > { %v1251_v12 = vadd.f32 %v1250_v21, %v1090_v2  ;;  %v2200_v21 = vsel %vm2057_vm0, %v1368_v13, 0  ;;  %v1438_v13 = vld [vmem:[%s5203_s3 + $0x1e8] sm:$0xff]  ;;  %v1439_v2 = vld [vmem:[%s5203_s3 + $0x1f0] sm:$0xff] }
 0x1c2   : > { %v3438_v27 = vpop.f32.mrf.mxu0  ;;  %1734 = vperm.xlu1 %3547, %v1432_v46   ;;  %v3598_v46 = vld [vmem:[%s5202_s2 + $0x28] sm:$0xff]  }
 0x1c3   : > { %v1262_v10 = vadd.f32 %v3438_v27, %v1101_v34  ;;  %v2197_v34 = vsel %vm2057_vm0, %v5210_v25, 0  ;;  %v5211_v27 = vpack.c.bf16 %v4403_v23, %v4400_v40  ;;  %v1446_v40 = vld [vmem:[%s5203_s3 + $0x228] sm:$0xff]  ;;  %v1445_v23 = vld [vmem:[%s5203_s3 + $0x220] sm:$0xff] }
 0x1c4   : > { %v1253_v52 = vpop.f32.mrf.mxu0  ;;  %1729 = vperm.xlu0 %3546, %v1431_v20   ;;  %v3599_v20 = vld [vmem:[%s5202_s2 + $0xa8] sm:$0xff]  }
 0x1c5   : > { %v1374_v57 = vpack.c.bf16 %v1262_v10, %v1259_v56  ;;  %v1254_v18 = vadd.f32 %v1253_v52, %v1093_v35  ;;  %v2194_v30 = vsel %vm2057_vm0, %v5211_v27, 0  ;;  %v1443_v56 = vld [vmem:[%s5203_s3 + $0x210] sm:$0xff]  ;;  %v5212_v10 = vpack.c.bf16 %v4408_v38, %v4389_v4  ;;  %v1450_v4 = vld [vmem:[%s5203_s3 + $0x248] sm:$0xff]  ;;  %v1449_v38 = vld [vmem:[%s5203_s3 + $0x240] sm:$0xff] }
 0x1c6   : > { %v3441_v48 = vpop.f32.mrf.mxu0  ;;  %1744 = vperm.xlu1 %3547, %v1434_v26   ;;  %v2188_v52 = vsel %vm2057_vm0, %v5213_v39, 0  ;;  %v3607_v26 = vld [vmem:[%s5202_s2 + $0xc8] sm:$0xff]  }
 0x1c7   : > { %v1373_v36 = vpack.c.bf16 %v1254_v18, %v1251_v12  ;;  %v1275_v31 = vadd.f32 %v3441_v48, %v1114_v1  ;;  %v2191_v35 = vsel %vm2057_vm0, %v5212_v10, 0  ;;  %v5214_v12 = vpack.c.bf16 %v4376_v45, %v4360_v15  ;;  %v1455_v18 = vld [vmem:[%s5203_s3 + $0x270] sm:$0xff]  ;;  %v3597_v48 = vld [vmem:[%s5202_s2 + $0xa0] sm:$0xff]   ;;  %v3603_v1 = vld [vmem:[%s5202_s2 + $0xb8] sm:$0xff]  }
 0x1c8   : > { %v1266_v42 = vpop.f32.mrf.mxu0  ;;  %1739 = vperm.xlu0 %3546, %v1433_v17   ;;  %v5215_v15 = vpack.c.bf16 %v4339_v47, %v4325_v51  ;;  %v3590_v51 = vld [vmem:[%s5202_s2 + $0x8] sm:$0xff]   ;;  %v3608_v17 = vld [vmem:[%s5202_s2 + $0x50] sm:$0xff]  }
 0x1c9   : > { %v1267_v60 = vadd.f32 %v1266_v42, %v1106_v44  ;;  %v3591_v47 = vld [vmem:[%s5202_s2 + $0x88] sm:$0xff]   ;;  %v3602_v42 = vld [vmem:[%s5202_s2 + $0x38] sm:$0xff]   ;;  %v3605_v44 = vld [vmem:[%s5202_s2 + $0xc0] sm:$0xff]  }
 0x1ca   : > { %v3442_v62 = vpop.f32.mrf.mxu0  ;;  %1754 = vperm.xlu1 %3547, %v1436_v16   ;;  %v2182_v45 = vsel %vm2057_vm0, %v5215_v15, 0  ;;  %v3616_v16 = vld [vmem:[%s5202_s2 + $0x70] sm:$0xff]  }
 0x1cb   : > { %v1278_v37 = vadd.f32 %v3442_v62, %v1117_v0  ;;  %v3604_v0 = vld [vmem:[%s5202_s2 + $0x40] sm:$0xff]   ;;  %v3606_v62 = vld [vmem:[%s5202_s2 + $0x48] sm:$0xff]  }
 0x1cc   : > { %v1269_v32 = vpop.f32.mrf.mxu0  ;;  %1749 = vperm.xlu0 %3546, %v1435_v19   ;;  %v3617_v19 = vld [vmem:[%s5202_s2 + $0xf0] sm:$0xff]  }
 0x1cd   : > { %v1376_v5 = vpack.c.bf16 %v1278_v37, %v1275_v31  ;;  %v1270_v8 = vadd.f32 %v1269_v32, %v1109_v59  ;;  %v3609_v31 = vld [vmem:[%s5202_s2 + $0xd0] sm:$0xff]   ;;  %v3610_v37 = vld [vmem:[%s5202_s2 + $0x58] sm:$0xff]   ;;  %v3612_v32 = vld [vmem:[%s5202_s2 + $0x60] sm:$0xff]  }
 0x1ce   : > { %1764 = vperm.xlu1 %3547, %v1438_v13   ;;  %v3611_v59 = vld [vmem:[%s5202_s2 + $0xd8] sm:$0xff]  }
 0x1cf   : > { %v1375_v7 = vpack.c.bf16 %v1270_v8, %v1267_v60  ;;  %3459 = vmatprep.subr.msk.bf16.mxu0 %vm2057_vm0, %v1376_v5  ;;  %3460 = vmatprep.subr.msk.bf16.mxu1 %vm2057_vm0, %v1376_v5  ;;  %v3613_v60 = vld [vmem:[%s5202_s2 + $0xe0] sm:$0xff]   ;;  %v3614_v5 = vld [vmem:[%s5202_s2 + $0x68] sm:$0xff]  }
 0x1d0   : > { %3300 = vmatpush3.bf16.xpose.msra.mxu0 %v2200_v21  ;;  %3451 = vmatpush3.bf16.xpose.msra.mxu1 %v2200_v21  ;;  %v3615_v8 = vld [vmem:[%s5202_s2 + $0xe8] sm:$0xff]   ;;  %v4793_v21 = vpop.permute.xlu1 %1469 }
 0x1d1   : > { %3461 = vmatprep.subr.msk.bf16.mxu0 %vm2057_vm0, %v1375_v7  ;;  %3462 = vmatprep.subr.msk.bf16.mxu1 %vm2057_vm0, %v1375_v7  ;;  %v4787_v7 = vpop.permute.xlu0 %1459 }
 0x1d2   : > { %1759 = vperm.xlu0 %3546, %v1437_v54   ;;  %1774 = vperm.xlu1 %3547, %v1440_v50   ;;  %v3619_v50 = vld [vmem:[%s5202_s2 + $0xf8] sm:$0xff]  }
 0x1d4   : > { %v4807_v54 = vpop.permute.xlu1 %1474 }
 0x1d5   : > { %v4801_v13 = vpop.permute.xlu0 %1464 }
 0x1d6   : > { %1769 = vperm.xlu0 %3546, %v1439_v2   ;;  %1784 = vperm.xlu1 %3547, %v1442_v33  }
 0x1d8   : > { %3302 = vmatpush3.bf16.xpose.msra.mxu0 %v2197_v34  ;;  %3452 = vmatpush3.bf16.xpose.msra.mxu1 %v2197_v34  ;;  %v3618_v34 = vld [vmem:[%s5202_s2 + $0x78] sm:$0xff]   ;;  %v4817_v2 = vpop.permute.xlu1 %1484 }
 0x1d9   : > { %3463 = vmatprep.subr.msk.bf16.mxu0 %vm2057_vm0, %v1374_v57  ;;  %3464 = vmatprep.subr.msk.bf16.mxu1 %vm2057_vm0, %v1374_v57  ;;  %v2185_v57 = vsel %vm2057_vm0, %v5214_v12, 0  ;;  %v4809_v25 = vpop.permute.xlu0 %1479  ;;  %v3625_v12 = vld [vmem:[%s5202_s2 + $0x128] sm:$0xff]  }
 0x1da   : > { %1779 = vperm.xlu0 %3546, %v1441_v49   ;;  %1794 = vperm.xlu1 %3547, %v1444_v43   ;;  %v3620_v49 = vld [vmem:[%s5202_s2 + $0x100] sm:$0xff]  }
 0x1dc   : > { %v4828_v27 = vpop.permute.xlu1 %1494 }
 0x1dd   : > { %v4823_v33 = vpop.permute.xlu0 %1489 }
 0x1de   : > { %1789 = vperm.xlu0 %3546, %v1443_v56   ;;  %1804 = vperm.xlu1 %3547, %v1446_v40   ;;  %v3621_v56 = vld [vmem:[%s5202_s2 + $0x108] sm:$0xff]  }
 0x1e0   : > { %3304 = vmatpush3.bf16.xpose.msra.mxu0 %v2194_v30  ;;  %3453 = vmatpush3.bf16.xpose.msra.mxu1 %v2194_v30  ;;  %v4835_v43 = vpop.permute.xlu1 %1504 }
 0x1e1   : > { %3465 = vmatprep.subr.msk.bf16.mxu0 %vm2057_vm0, %v1373_v36  ;;  %3466 = vmatprep.subr.msk.bf16.mxu1 %vm2057_vm0, %v1373_v36  ;;  %v3601_v36 = vld [vmem:[%s5202_s2 + $0xb0] sm:$0xff]   ;;  %v4830_v30 = vpop.permute.xlu0 %1499 }
 0x1e2   : > { %1799 = vperm.xlu0 %3546, %v1445_v23   ;;  %1814 = vperm.xlu1 %3547, %v1448_v55  }
 0x1e4   : > { %v4844_v23 = vpop.permute.xlu1 %1514 }
 0x1e5   : > { %v4840_v40 = vpop.permute.xlu0 %1509 }
 0x1e6   : > { %1809 = vperm.xlu0 %3546, %v1447_v63   ;;  %1824 = vperm.xlu1 %3547, %v1450_v4   ;;  %v3623_v4 = vld [vmem:[%s5202_s2 + $0x118] sm:$0xff]  }
 0x1e8   : > { %3306 = vmatpush3.bf16.xpose.msra.mxu0 %v2191_v35  ;;  %3454 = vmatpush3.bf16.xpose.msra.mxu1 %v2191_v35  ;;  %v3622_v35 = vld [vmem:[%s5202_s2 + $0x110] sm:$0xff]   ;;  %v4851_v55 = vpop.permute.xlu1 %1524 }
 0x1e9   : > { %3467 = vmatprep.subr.msk.bf16.mxu0 %vm2057_vm0, %v4490_v61  ;;  %3468 = vmatprep.subr.msk.bf16.mxu1 %vm2057_vm0, %v4490_v61  ;;  %v1452_v61 = vld [vmem:[%s5203_s3 + $0x258] sm:$0xff]  ;;  %v4846_v10 = vpop.permute.xlu0 %1519 }
 0x1ea   : > { %1819 = vperm.xlu0 %3546, %v1449_v38   ;;  %1834 = vperm.xlu1 %3547, %v1452_v61   ;;  %v3624_v61 = vld [vmem:[%s5202_s2 + $0x120] sm:$0xff]  }
 0x1ec   : > { %v4860_v38 = vpop.permute.xlu1 %1534 }
 0x1ed   : > { %v4855_v63 = vpop.permute.xlu0 %1529 }
 0x1ee   : > { %1829 = vperm.xlu0 %3546, %v1451_v58   ;;  %1844 = vperm.xlu1 %3547, %v1454_v14  }
 0x1f0   : > { %3308 = vmatpush3.bf16.xpose.msra.mxu0 %v2188_v52  ;;  %3455 = vmatpush3.bf16.xpose.msra.mxu1 %v2188_v52  ;;  %v4866_v52 = vpop.permute.xlu1 %1544 }
 0x1f1   : > { %3469 = vmatprep.subr.msk.bf16.mxu0 %vm2057_vm0, %v4503_v22  ;;  %3470 = vmatprep.subr.msk.bf16.mxu1 %vm2057_vm0, %v4503_v22  ;;  %v1456_v22 = vld [vmem:[%s5203_s3 + $0x278] sm:$0xff]  ;;  %v4862_v39 = vpop.permute.xlu0 %1539 }
 0x1f2   : > { %1839 = vperm.xlu0 %3546, %v1453_v11   ;;  %1854 = vperm.xlu1 %3547, %v1456_v22  }
 0x1f4   : > { %v4875_v14 = vpop.permute.xlu1 %1554 }
 0x1f5   : > { %v4871_v58 = vpop.permute.xlu0 %1549 }
 0x1f6   : > { %1849 = vperm.xlu0 %3546, %v1455_v18   ;;  %v3626_v18 = vld [vmem:[%s5202_s2 + $0x130] sm:$0xff]  }
 0x1f8   : > { %3310 = vmatpush3.bf16.xpose.msra.mxu0 %v2185_v57  ;;  %3456 = vmatpush3.bf16.xpose.msra.mxu1 %v2185_v57  ;;  %v4882_v57 = vpop.permute.xlu1 %1564 }
 0x1f9   : > { %3471 = vmatprep.subr.msk.bf16.mxu0 %vm2057_vm0, %v4467_v9  ;;  %3472 = vmatprep.subr.msk.bf16.mxu1 %vm2057_vm0, %v4467_v9  ;;  %v2179_v9 = vsel %vm2057_vm0, %v5216_v41, 0  ;;  %v4877_v11 = vpop.permute.xlu0 %1559 }
 0x1fc   : > { %v4891_v15 = vpop.permute.xlu1 %1574 }
 0x1fd   : > { %v4886_v22 = vpop.permute.xlu0 %1569 }
 0x200   : > { %3312 = vmatpush3.bf16.xpose.msra.mxu0 %v2182_v45  ;;  %3457 = vmatpush3.bf16.xpose.msra.mxu1 %v2182_v45  ;;  %v4897_v41 = vpop.permute.xlu1 %1584 }
 0x201   : > { %3473 = vmatprep.subr.msk.bf16.mxu0 %vm2057_vm0, %v4476_v6  ;;  %3474 = vmatprep.subr.msk.bf16.mxu1 %vm2057_vm0, %v4476_v6  ;;  %v3596_v6 = vld [vmem:[%s5202_s2 + $0x20] sm:$0xff]   ;;  %v4893_v45 = vpop.permute.xlu0 %1579 }
 0x208   : > { %3314 = vmatpush3.bf16.xpose.msra.mxu0 %v2179_v9  ;;  %3458 = vmatpush3.bf16.xpose.msra.mxu1 %v2179_v9  ;;  %v3627_v9 = vld [vmem:[%s5202_s2 + $0x138] sm:$0xff]  }
 0x20f   : > { %3316 = vmatmul.mubr.msk.bf16.vlgmr.msra.gmra.mxu0 %vm2057_vm0, %v4293_v28  ;;  %3348 = vmatmul.mubr.msk.bf16.vlgmr.msra.gmra.mxu1 %vm2057_vm0, %v4298_v29  ;;  %v3594_v28 = vld [vmem:[%s5202_s2 + $0x18] sm:$0xff]  }
 0x210   : > { %3317 = vmatprep.mubr.msk.bf16.mxu0 %vm2057_vm0, %v3590_v51  ;;  %3349 = vmatprep.mubr.msk.bf16.mxu1 %vm2057_vm0, %v3591_v47  ;;  %v3595_v29 = vld [vmem:[%s5202_s2 + $0x98] sm:$0xff]  }
 0x217   : > { %3318 = vmatmul.mubr.msk.bf16.gmra.mxu0 %vm2057_vm0, %v3590_v51  ;;  %3350 = vmatmul.mubr.msk.bf16.gmra.mxu1 %vm2057_vm0, %v3591_v47  ;;  %v4902_v51 = vpop.permute.xlu0 %1589  ;;  %v4906_v47 = vpop.permute.xlu1 %1594 }
 0x218   : > { %3319 = vmatprep.mubr.msk.bf16.mxu0 %vm2057_vm0, %v3592_v53  ;;  %3351 = vmatprep.mubr.msk.bf16.mxu1 %vm2057_vm0, %v3593_v3 }
 0x21f   : > { %3320 = vmatmul.mubr.msk.bf16.gmra.mxu0 %vm2057_vm0, %v3592_v53  ;;  %3352 = vmatmul.mubr.msk.bf16.gmra.mxu1 %vm2057_vm0, %v3593_v3  ;;  %v4908_v53 = vpop.permute.xlu0 %1599  ;;  %v4910_v3 = vpop.permute.xlu1 %1604 }
 0x220   : > { %3321 = vmatprep.mubr.msk.bf16.mxu0 %vm2057_vm0, %v3594_v28  ;;  %3353 = vmatprep.mubr.msk.bf16.mxu1 %vm2057_vm0, %v3595_v29 }
 0x227   : > { %3322 = vmatmul.mubr.msk.bf16.gmra.mxu0 %vm2057_vm0, %v3594_v28  ;;  %3354 = vmatmul.mubr.msk.bf16.gmra.mxu1 %vm2057_vm0, %v3595_v29  ;;  %v4913_v28 = vpop.permute.xlu0 %1609  ;;  %v4915_v29 = vpop.permute.xlu1 %1614 }
 0x228   : > { %3323 = vmatprep.mubr.msk.bf16.mxu0 %vm2057_vm0, %v3596_v6  ;;  %3355 = vmatprep.mubr.msk.bf16.mxu1 %vm2057_vm0, %v3597_v48 }
 0x22f   : > { %3324 = vmatmul.mubr.msk.bf16.gmra.mxu0 %vm2057_vm0, %v3596_v6  ;;  %3356 = vmatmul.mubr.msk.bf16.gmra.mxu1 %vm2057_vm0, %v3597_v48  ;;  %v1620_v6 = vpop.permute.xlu0 %1619 }
 0x230   : > { %3325 = vmatprep.mubr.msk.bf16.mxu0 %vm2057_vm0, %v3598_v46  ;;  %3357 = vmatprep.mubr.msk.bf16.mxu1 %vm2057_vm0, %v3599_v20 }
 0x237   : > { %3326 = vmatmul.mubr.msk.bf16.gmra.mxu0 %vm2057_vm0, %v3598_v46  ;;  %3358 = vmatmul.mubr.msk.bf16.gmra.mxu1 %vm2057_vm0, %v3599_v20 }
 0x238   : > { %3327 = vmatprep.mubr.msk.bf16.mxu0 %vm2057_vm0, %v3600_v24  ;;  %3359 = vmatprep.mubr.msk.bf16.mxu1 %vm2057_vm0, %v3601_v36 }
 0x23f   : > { %3328 = vmatmul.mubr.msk.bf16.gmra.mxu0 %vm2057_vm0, %v3600_v24  ;;  %3360 = vmatmul.mubr.msk.bf16.gmra.mxu1 %vm2057_vm0, %v3601_v36 }
 0x240   : > { %3329 = vmatprep.mubr.msk.bf16.mxu0 %vm2057_vm0, %v3602_v42  ;;  %3361 = vmatprep.mubr.msk.bf16.mxu1 %vm2057_vm0, %v3603_v1 }
 0x247   : > { %3330 = vmatmul.mubr.msk.bf16.gmra.mxu0 %vm2057_vm0, %v3602_v42  ;;  %3362 = vmatmul.mubr.msk.bf16.gmra.mxu1 %vm2057_vm0, %v3603_v1 }
 0x248   : > { %3331 = vmatprep.mubr.msk.bf16.mxu0 %vm2057_vm0, %v3604_v0  ;;  %3363 = vmatprep.mubr.msk.bf16.mxu1 %vm2057_vm0, %v3605_v44 }
 0x24f   : > { %3332 = vmatmul.mubr.msk.bf16.gmra.mxu0 %vm2057_vm0, %v3604_v0  ;;  %3364 = vmatmul.mubr.msk.bf16.gmra.mxu1 %vm2057_vm0, %v3605_v44  ;;  %v1625_v0 = vpop.permute.xlu1 %1624 }
 0x250   : > { %3333 = vmatprep.mubr.msk.bf16.mxu0 %vm2057_vm0, %v3606_v62  ;;  %3365 = vmatprep.mubr.msk.bf16.mxu1 %vm2057_vm0, %v3607_v26 }
 0x257   : > { %3334 = vmatmul.mubr.msk.bf16.gmra.mxu0 %vm2057_vm0, %v3606_v62  ;;  %3366 = vmatmul.mubr.msk.bf16.gmra.mxu1 %vm2057_vm0, %v3607_v26 }
 0x258   : > { %3335 = vmatprep.mubr.msk.bf16.mxu0 %vm2057_vm0, %v3608_v17  ;;  %3367 = vmatprep.mubr.msk.bf16.mxu1 %vm2057_vm0, %v3609_v31 }
 0x25f   : > { %3336 = vmatmul.mubr.msk.bf16.gmra.mxu0 %vm2057_vm0, %v3608_v17  ;;  %3368 = vmatmul.mubr.msk.bf16.gmra.mxu1 %vm2057_vm0, %v3609_v31 }
 0x260   : > { %3337 = vmatprep.mubr.msk.bf16.mxu0 %vm2057_vm0, %v3610_v37  ;;  %3369 = vmatprep.mubr.msk.bf16.mxu1 %vm2057_vm0, %v3611_v59 }
 0x267   : > { %3338 = vmatmul.mubr.msk.bf16.gmra.mxu0 %vm2057_vm0, %v3610_v37  ;;  %3370 = vmatmul.mubr.msk.bf16.gmra.mxu1 %vm2057_vm0, %v3611_v59 }
 0x268   : > { %3339 = vmatprep.mubr.msk.bf16.mxu0 %vm2057_vm0, %v3612_v32  ;;  %3371 = vmatprep.mubr.msk.bf16.mxu1 %vm2057_vm0, %v3613_v60 }
 0x26f   : > { %3340 = vmatmul.mubr.msk.bf16.gmra.mxu0 %vm2057_vm0, %v3612_v32  ;;  %3372 = vmatmul.mubr.msk.bf16.gmra.mxu1 %vm2057_vm0, %v3613_v60 }
 0x270   : > { %3341 = vmatprep.mubr.msk.bf16.mxu0 %vm2057_vm0, %v3614_v5  ;;  %3373 = vmatprep.mubr.msk.bf16.mxu1 %vm2057_vm0, %v3615_v8 }
 0x277   : > { %3342 = vmatmul.mubr.msk.bf16.gmra.mxu0 %vm2057_vm0, %v3614_v5  ;;  %3374 = vmatmul.mubr.msk.bf16.gmra.mxu1 %vm2057_vm0, %v3615_v8  ;;  %v1630_v5 = vpop.permute.xlu0 %1629 }
 0x278   : > { %3343 = vmatprep.mubr.msk.bf16.mxu0 %vm2057_vm0, %v3616_v16  ;;  %3375 = vmatprep.mubr.msk.bf16.mxu1 %vm2057_vm0, %v3617_v19 }
 0x27f   : > { %3344 = vmatmul.mubr.msk.bf16.gmra.mxu0 %vm2057_vm0, %v3616_v16  ;;  %3376 = vmatmul.mubr.msk.bf16.gmra.mxu1 %vm2057_vm0, %v3617_v19 }
 0x280   : > { %3345 = vmatprep.mubr.msk.bf16.mxu0 %vm2057_vm0, %v3618_v34  ;;  %3377 = vmatprep.mubr.msk.bf16.mxu1 %vm2057_vm0, %v3619_v50 }
 0x287   : > { %3346 = vmatmul.mubr.msk.bf16.gmra.mxu0 %vm2057_vm0, %v3618_v34  ;;  %3378 = vmatmul.mubr.msk.bf16.gmra.mxu1 %vm2057_vm0, %v3619_v50 }
 0x288   : > { %3379 = vmatprep.mubr.msk.bf16.mxu1 %vm2057_vm0, %v3620_v49 }
 0x28f   : > { %3380 = vmatmul.mubr.msk.bf16.gmra.mxu1 %vm2057_vm0, %v3620_v49  ;;  %v1635_v49 = vpop.permute.xlu1 %1634 }
 0x290   : > { %3381 = vmatprep.mubr.msk.bf16.mxu1 %vm2057_vm0, %v3621_v56 }
 0x297   : > { %3382 = vmatmul.mubr.msk.bf16.gmra.mxu1 %vm2057_vm0, %v3621_v56 }
 0x298   : > { %3383 = vmatprep.mubr.msk.bf16.mxu1 %vm2057_vm0, %v3622_v35 }
 0x29f   : > { %3384 = vmatmul.mubr.msk.bf16.gmra.mxu1 %vm2057_vm0, %v3622_v35 }
 0x2a0   : > { %3385 = vmatprep.mubr.msk.bf16.mxu1 %vm2057_vm0, %v3623_v4 }
 0x2a7   : > { %3386 = vmatmul.mubr.msk.bf16.gmra.mxu1 %vm2057_vm0, %v3623_v4 }
 0x2a8   : > { %3387 = vmatprep.mubr.msk.bf16.mxu1 %vm2057_vm0, %v3624_v61 }
 0x2af   : > { %3388 = vmatmul.mubr.msk.bf16.gmra.mxu1 %vm2057_vm0, %v3624_v61 }
 0x2b0   : > { %3389 = vmatprep.mubr.msk.bf16.mxu1 %vm2057_vm0, %v3625_v12 }
 0x2b7   : > { %3390 = vmatmul.mubr.msk.bf16.gmra.mxu1 %vm2057_vm0, %v3625_v12 }
 0x2b8   : > { %3391 = vmatprep.mubr.msk.bf16.mxu1 %vm2057_vm0, %v3626_v18 }
 0x2bf   : > { %3392 = vmatmul.mubr.msk.bf16.gmra.mxu1 %vm2057_vm0, %v3626_v18 }
 0x2c0   : > { %3393 = vmatprep.mubr.msk.bf16.mxu1 %vm2057_vm0, %v3627_v9 }
 0x2c7   : > { %3394 = vmatmul.mubr.msk.bf16.gmra.mxu1 %vm2057_vm0, %v3627_v9 }
 0x2cf   : > { %v2260_v48 = vpop.f32.mrf.mxu0  ;;  %v2420_v46 = vpop.f32.mrf.mxu1 }
 0x2d0   : > { %v2261_v20 = vadd.f32 %v2260_v48, %v4787_v7  ;;  %v2421_v24 = vadd.f32 %v2420_v46, %v1620_v6  ;;  %v1640_v48 = vpop.permute.xlu0 %1639 }
 0x2d1   : > { %v2262_v36 = vpop.f32.mrf.mxu0  ;;  %v2422_v42 = vpop.f32.mrf.mxu1 }
 0x2d2   : > { %2659 = vst [vmem:[%s4920_s13] sm:$0xff] %v2261_v20  ;;  %v2263_v1 = vadd.f32 %v2262_v36, %v4787_v7  ;;  %v2423_v44 = vadd.f32 %v2422_v42, %v1620_v6  ;;  %2723 = vst [vmem:[%s4920_s13 + $0x200] sm:$0xff] %v2421_v24 }
 0x2d3   : > { %v2264_v62 = vpop.f32.mrf.mxu0  ;;  %v2424_v26 = vpop.f32.mrf.mxu1 }
 0x2d4   : > { %2660 = vst [vmem:[%s4920_s13 + $0x8] sm:$0xff] %v2263_v1  ;;  %v2265_v17 = vadd.f32 %v2264_v62, %v4801_v13  ;;  %v2425_v31 = vadd.f32 %v2424_v26, %v1625_v0  ;;  %2724 = vst [vmem:[%s4920_s13 + $0x208] sm:$0xff] %v2423_v44 }
 0x2d5   : > { %v2266_v37 = vpop.f32.mrf.mxu0  ;;  %v2426_v59 = vpop.f32.mrf.mxu1 }
 0x2d6   : > { %2661 = vst [vmem:[%s4920_s13 + $0x10] sm:$0xff] %v2265_v17  ;;  %v2267_v32 = vadd.f32 %v2266_v37, %v4801_v13  ;;  %v2427_v60 = vadd.f32 %v2426_v59, %v1625_v0  ;;  %2725 = vst [vmem:[%s4920_s13 + $0x210] sm:$0xff] %v2425_v31  ;;  %v1645_v0 = vpop.permute.xlu1 %1644 }
 0x2d7   : > { %v2270_v8 = vpop.f32.mrf.mxu0  ;;  %v2430_v7 = vpop.f32.mrf.mxu1 }
 0x2d8   : > { %2662 = vst [vmem:[%s4920_s13 + $0x18] sm:$0xff] %v2267_v32  ;;  %2726 = vst [vmem:[%s4920_s13 + $0x218] sm:$0xff] %v2427_v60  ;;  %v2271_v16 = vadd.f32 %v2270_v8, %v4793_v21  ;;  %v2431_v19 = vadd.f32 %v2430_v7, %v1630_v5  ;;  %v1650_v32 = vpop.permute.xlu0 %1649 }
 0x2d9   : > { %v2272_v34 = vpop.f32.mrf.mxu0  ;;  %v2432_v50 = vpop.f32.mrf.mxu1 }
 0x2da   : > { %2663 = vst [vmem:[%s4920_s13 + $0x20] sm:$0xff] %v2271_v16  ;;  %v2273_v13 = vadd.f32 %v2272_v34, %v4793_v21  ;;  %v2433_v56 = vadd.f32 %v2432_v50, %v1630_v5  ;;  %2727 = vst [vmem:[%s4920_s13 + $0x220] sm:$0xff] %v2431_v19  ;;  %v1655_v50 = vpop.permute.xlu1 %1654 }
 0x2db   : > { %v2274_v35 = vpop.f32.mrf.mxu0  ;;  %v2434_v4 = vpop.f32.mrf.mxu1 }
 0x2dc   : > { %2664 = vst [vmem:[%s4920_s13 + $0x28] sm:$0xff] %v2273_v13  ;;  %2728 = vst [vmem:[%s4920_s13 + $0x228] sm:$0xff] %v2433_v56  ;;  %v2275_v61 = vadd.f32 %v2274_v35, %v4807_v54  ;;  %v2435_v12 = vadd.f32 %v2434_v4, %v1635_v49 }
 0x2dd   : > { %v2276_v18 = vpop.f32.mrf.mxu0  ;;  %v2436_v9 = vpop.f32.mrf.mxu1 }
 0x2de   : > { %2665 = vst [vmem:[%s4920_s13 + $0x30] sm:$0xff] %v2275_v61  ;;  %2729 = vst [vmem:[%s4920_s13 + $0x230] sm:$0xff] %v2435_v12  ;;  %v2277_v21 = vadd.f32 %v2276_v18, %v4807_v54  ;;  %v2437_v6 = vadd.f32 %v2436_v9, %v1635_v49  ;;  %v1660_v18 = vpop.permute.xlu0 %1659 }
 0x2df   : > { %v2280_v46 = vpop.f32.mrf.mxu0  ;;  %v2440_v20 = vpop.f32.mrf.mxu1 }
 0x2e0   : > { %2666 = vst [vmem:[%s4920_s13 + $0x38] sm:$0xff] %v2277_v21  ;;  %2730 = vst [vmem:[%s4920_s13 + $0x238] sm:$0xff] %v2437_v6  ;;  %v2281_v24 = vadd.f32 %v2280_v46, %v4809_v25  ;;  %v2441_v36 = vadd.f32 %v2440_v20, %v1640_v48 }
 0x2e1   : > { %v2282_v42 = vpop.f32.mrf.mxu0  ;;  %v2442_v1 = vpop.f32.mrf.mxu1 }
 0x2e2   : > { %2667 = vst [vmem:[%s4920_s13 + $0x40] sm:$0xff] %v2281_v24  ;;  %2731 = vst [vmem:[%s4920_s13 + $0x240] sm:$0xff] %v2441_v36  ;;  %v2283_v54 = vadd.f32 %v2282_v42, %v4809_v25  ;;  %v2443_v44 = vadd.f32 %v2442_v1, %v1640_v48  ;;  %v1665_v36 = vpop.permute.xlu1 %1664 }
 0x2e3   : > { %v2284_v62 = vpop.f32.mrf.mxu0  ;;  %v2444_v26 = vpop.f32.mrf.mxu1 }
 0x2e4   : > { %2668 = vst [vmem:[%s4920_s13 + $0x48] sm:$0xff] %v2283_v54  ;;  %2732 = vst [vmem:[%s4920_s13 + $0x248] sm:$0xff] %v2443_v44  ;;  %v2285_v17 = vadd.f32 %v2284_v62, %v4817_v2  ;;  %v2445_v31 = vadd.f32 %v2444_v26, %v1645_v0 }
 0x2e5   : > { %v2286_v37 = vpop.f32.mrf.mxu0  ;;  %v2446_v59 = vpop.f32.mrf.mxu1 }
 0x2e6   : > { %2669 = vst [vmem:[%s4920_s13 + $0x50] sm:$0xff] %v2285_v17  ;;  %2733 = vst [vmem:[%s4920_s13 + $0x250] sm:$0xff] %v2445_v31  ;;  %v2287_v60 = vadd.f32 %v2286_v37, %v4817_v2  ;;  %v2447_v25 = vadd.f32 %v2446_v59, %v1645_v0  ;;  %v1670_v17 = vpop.permute.xlu0 %1669 }
 0x2e7   : > { %v2290_v5 = vpop.f32.mrf.mxu0  ;;  %v2450_v8 = vpop.f32.mrf.mxu1 }
 0x2e8   : > { %2670 = vst [vmem:[%s4920_s13 + $0x58] sm:$0xff] %v2287_v60  ;;  %2734 = vst [vmem:[%s4920_s13 + $0x258] sm:$0xff] %v2447_v25  ;;  %v2291_v7 = vadd.f32 %v2290_v5, %v4823_v33  ;;  %v2451_v16 = vadd.f32 %v2450_v8, %v1650_v32  ;;  %v1675_v8 = vpop.permute.xlu1 %1674 }
 0x2e9   : > { %v2292_v19 = vpop.f32.mrf.mxu0  ;;  %v2452_v34 = vpop.f32.mrf.mxu1 }
 0x2ea   : > { %2671 = vst [vmem:[%s4920_s13 + $0x60] sm:$0xff] %v2291_v7  ;;  %2735 = vst [vmem:[%s4920_s13 + $0x260] sm:$0xff] %v2451_v16  ;;  %v2293_v13 = vadd.f32 %v2292_v19, %v4823_v33  ;;  %v2453_v2 = vadd.f32 %v2452_v34, %v1650_v32 }
 0x2eb   : > { %v2294_v49 = vpop.f32.mrf.mxu0  ;;  %v2454_v56 = vpop.f32.mrf.mxu1 }
 0x2ec   : > { %2672 = vst [vmem:[%s4920_s13 + $0x68] sm:$0xff] %v2293_v13  ;;  %2736 = vst [vmem:[%s4920_s13 + $0x268] sm:$0xff] %v2453_v2  ;;  %v2295_v35 = vadd.f32 %v2294_v49, %v4828_v27  ;;  %v2455_v4 = vadd.f32 %v2454_v56, %v1655_v50  ;;  %v1680_v49 = vpop.permute.xlu0 %1679 }
 0x2ed   : > { %v2296_v61 = vpop.f32.mrf.mxu0  ;;  %v2456_v12 = vpop.f32.mrf.mxu1 }
 0x2ee   : > { %2673 = vst [vmem:[%s4920_s13 + $0x70] sm:$0xff] %v2295_v35  ;;  %2737 = vst [vmem:[%s4920_s13 + $0x270] sm:$0xff] %v2455_v4  ;;  %v2297_v9 = vadd.f32 %v2296_v61, %v4828_v27  ;;  %v2457_v33 = vadd.f32 %v2456_v12, %v1655_v50 }
 0x2ef   : > { %v2300_v21 = vpop.f32.mrf.mxu0  ;;  %v2460_v6 = vpop.f32.mrf.mxu1 }
 0x2f0   : > { %2674 = vst [vmem:[%s4920_s13 + $0x78] sm:$0xff] %v2297_v9  ;;  %2738 = vst [vmem:[%s4920_s13 + $0x278] sm:$0xff] %v2457_v33  ;;  %v2301_v48 = vadd.f32 %v2300_v21, %v4830_v30  ;;  %v2461_v46 = vadd.f32 %v2460_v6, %v1660_v18  ;;  %v1685_v33 = vpop.permute.xlu1 %1684 }
 0x2f1   : > { %v2302_v20 = vpop.f32.mrf.mxu0  ;;  %v2462_v24 = vpop.f32.mrf.mxu1 }
 0x2f2   : > { %2675 = vst [vmem:[%s4920_s13 + $0x80] sm:$0xff] %v2301_v48  ;;  %2739 = vst [vmem:[%s4920_s13 + $0x280] sm:$0xff] %v2461_v46  ;;  %v2303_v42 = vadd.f32 %v2302_v20, %v4830_v30  ;;  %v2463_v27 = vadd.f32 %v2462_v24, %v1660_v18 }
 0x2f3   : > { %v2304_v1 = vpop.f32.mrf.mxu0  ;;  %v2464_v0 = vpop.f32.mrf.mxu1 }
 0x2f4   : > { %2676 = vst [vmem:[%s4920_s13 + $0x88] sm:$0xff] %v2303_v42  ;;  %2740 = vst [vmem:[%s4920_s13 + $0x288] sm:$0xff] %v2463_v27  ;;  %v2305_v54 = vadd.f32 %v2304_v1, %v4835_v43  ;;  %v2465_v44 = vadd.f32 %v2464_v0, %v1665_v36  ;;  %v1690_v42 = vpop.permute.xlu0 %1689 }
 0x2f5   : > { %v2306_v62 = vpop.f32.mrf.mxu0  ;;  %v2466_v26 = vpop.f32.mrf.mxu1 }
 0x2f6   : > { %2677 = vst [vmem:[%s4920_s13 + $0x90] sm:$0xff] %v2305_v54  ;;  %2741 = vst [vmem:[%s4920_s13 + $0x290] sm:$0xff] %v2465_v44  ;;  %v2307_v31 = vadd.f32 %v2306_v62, %v4835_v43  ;;  %v2467_v30 = vadd.f32 %v2466_v26, %v1665_v36 }
 0x2f7   : > { %v2310_v37 = vpop.f32.mrf.mxu0  ;;  %v2470_v59 = vpop.f32.mrf.mxu1 }
 0x2f8   : > { %2678 = vst [vmem:[%s4920_s13 + $0x98] sm:$0xff] %v2307_v31  ;;  %2742 = vst [vmem:[%s4920_s13 + $0x298] sm:$0xff] %v2467_v30  ;;  %v2311_v32 = vadd.f32 %v2310_v37, %v4840_v40  ;;  %v2471_v60 = vadd.f32 %v2470_v59, %v1670_v17 }
 0x2f9   : > { %v2312_v25 = vpop.f32.mrf.mxu0  ;;  %v2472_v5 = vpop.f32.mrf.mxu1 }
 0x2fa   : > { %2679 = vst [vmem:[%s4920_s13 + $0xa0] sm:$0xff] %v2311_v32  ;;  %2743 = vst [vmem:[%s4920_s13 + $0x2a0] sm:$0xff] %v2471_v60  ;;  %v2313_v7 = vadd.f32 %v2312_v25, %v4840_v40  ;;  %v2473_v43 = vadd.f32 %v2472_v5, %v1670_v17  ;;  %v1695_v17 = vpop.permute.xlu1 %1694  ;;  %v1700_v5 = vpop.permute.xlu0 %1699 }
 0x2fb   : > { %v2314_v16 = vpop.f32.mrf.mxu0  ;;  %v2474_v19 = vpop.f32.mrf.mxu1 }
 0x2fc   : > { %2680 = vst [vmem:[%s4920_s13 + $0xa8] sm:$0xff] %v2313_v7  ;;  %2744 = vst [vmem:[%s4920_s13 + $0x2a8] sm:$0xff] %v2473_v43  ;;  %v2315_v34 = vadd.f32 %v2314_v16, %v4844_v23  ;;  %v2475_v50 = vadd.f32 %v2474_v19, %v1675_v8 }
 0x2fd   : > { %v2316_v13 = vpop.f32.mrf.mxu0  ;;  %v2476_v2 = vpop.f32.mrf.mxu1 }
 0x2fe   : > { %2681 = vst [vmem:[%s4920_s13 + $0xb0] sm:$0xff] %v2315_v34  ;;  %2745 = vst [vmem:[%s4920_s13 + $0x2b0] sm:$0xff] %v2475_v50  ;;  %v2317_v56 = vadd.f32 %v2316_v13, %v4844_v23  ;;  %v2477_v40 = vadd.f32 %v2476_v2, %v1675_v8  ;;  %v1705_v13 = vpop.permute.xlu1 %1704 }
 0x2ff   : > { %v2320_v35 = vpop.f32.mrf.mxu0  ;;  %v2480_v4 = vpop.f32.mrf.mxu1 }
 0x300   : > { %2682 = vst [vmem:[%s4920_s13 + $0xb8] sm:$0xff] %v2317_v56  ;;  %2746 = vst [vmem:[%s4920_s13 + $0x2b8] sm:$0xff] %v2477_v40  ;;  %v2321_v61 = vadd.f32 %v2320_v35, %v4846_v10  ;;  %v2481_v12 = vadd.f32 %v2480_v4, %v1680_v49 }
 0x301   : > { %v2322_v18 = vpop.f32.mrf.mxu0  ;;  %v2482_v9 = vpop.f32.mrf.mxu1 }
 0x302   : > { %2683 = vst [vmem:[%s4920_s13 + $0xc0] sm:$0xff] %v2321_v61  ;;  %2747 = vst [vmem:[%s4920_s13 + $0x2c0] sm:$0xff] %v2481_v12  ;;  %v2323_v21 = vadd.f32 %v2322_v18, %v4846_v10  ;;  %v2483_v23 = vadd.f32 %v2482_v9, %v1680_v49  ;;  %v1710_v12 = vpop.permute.xlu0 %1709 }
 0x303   : > { %v2324_v6 = vpop.f32.mrf.mxu0  ;;  %v2484_v48 = vpop.f32.mrf.mxu1 }
 0x304   : > { %2684 = vst [vmem:[%s4920_s13 + $0xc8] sm:$0xff] %v2323_v21  ;;  %2748 = vst [vmem:[%s4920_s13 + $0x2c8] sm:$0xff] %v2483_v23  ;;  %v2325_v46 = vadd.f32 %v2324_v6, %v4851_v55  ;;  %v2485_v20 = vadd.f32 %v2484_v48, %v1685_v33 }
 0x305   : > { %v2326_v24 = vpop.f32.mrf.mxu0  ;;  %v2486_v36 = vpop.f32.mrf.mxu1 }
 0x306   : > { %2685 = vst [vmem:[%s4920_s13 + $0xd0] sm:$0xff] %v2325_v46  ;;  %2749 = vst [vmem:[%s4920_s13 + $0x2d0] sm:$0xff] %v2485_v20  ;;  %v2327_v27 = vadd.f32 %v2326_v24, %v4851_v55  ;;  %v2487_v10 = vadd.f32 %v2486_v36, %v1685_v33  ;;  %v1715_v46 = vpop.permute.xlu1 %1714 }
 0x307   : > { %v2330_v1 = vpop.f32.mrf.mxu0  ;;  %v2490_v0 = vpop.f32.mrf.mxu1 }
 0x308   : > { %2686 = vst [vmem:[%s4920_s13 + $0xd8] sm:$0xff] %v2327_v27  ;;  %2750 = vst [vmem:[%s4920_s13 + $0x2d8] sm:$0xff] %v2487_v10  ;;  %v2331_v54 = vadd.f32 %v2330_v1, %v4855_v63  ;;  %v2491_v44 = vadd.f32 %v2490_v0, %v1690_v42  ;;  %v1720_v0 = vpop.permute.xlu0 %1719 }
 0x309   : > { %v2332_v62 = vpop.f32.mrf.mxu0  ;;  %v2492_v26 = vpop.f32.mrf.mxu1 }
 0x30a   : > { %2687 = vst [vmem:[%s4920_s13 + $0xe0] sm:$0xff] %v2331_v54  ;;  %2751 = vst [vmem:[%s4920_s13 + $0x2e0] sm:$0xff] %v2491_v44  ;;  %v2333_v31 = vadd.f32 %v2332_v62, %v4855_v63  ;;  %v2493_v55 = vadd.f32 %v2492_v26, %v1690_v42 }
 0x30b   : > { %v2334_v30 = vpop.f32.mrf.mxu0  ;;  %v2494_v37 = vpop.f32.mrf.mxu1 }
 0x30c   : > { %2688 = vst [vmem:[%s4920_s13 + $0xe8] sm:$0xff] %v2333_v31  ;;  %2752 = vst [vmem:[%s4920_s13 + $0x2e8] sm:$0xff] %v2493_v55  ;;  %v2335_v59 = vadd.f32 %v2334_v30, %v4860_v38  ;;  %v2495_v32 = vadd.f32 %v2494_v37, %v1695_v17  ;;  %v1725_v30 = vpop.permute.xlu1 %1724 }
 0x30d   : > { %v2336_v60 = vpop.f32.mrf.mxu0  ;;  %v2496_v25 = vpop.f32.mrf.mxu1 }
 0x30e   : > { %2689 = vst [vmem:[%s4920_s13 + $0xf0] sm:$0xff] %v2335_v59  ;;  %2753 = vst [vmem:[%s4920_s13 + $0x2f0] sm:$0xff] %v2495_v32  ;;  %v2337_v8 = vadd.f32 %v2336_v60, %v4860_v38  ;;  %v2497_v63 = vadd.f32 %v2496_v25, %v1695_v17 }
 0x30f   : > { %v2340_v7 = vpop.f32.mrf.mxu0  ;;  %v2500_v43 = vpop.f32.mrf.mxu1 }
 0x310   : > { %2690 = vst [vmem:[%s4920_s13 + $0xf8] sm:$0xff] %v2337_v8  ;;  %2754 = vst [vmem:[%s4920_s13 + $0x2f8] sm:$0xff] %v2497_v63  ;;  %v2341_v16 = vadd.f32 %v2340_v7, %v4862_v39  ;;  %v2501_v19 = vadd.f32 %v2500_v43, %v1700_v5  ;;  %v1730_v63 = vpop.permute.xlu0 %1729 }
 0x311   : > { %v2342_v34 = vpop.f32.mrf.mxu0  ;;  %v2502_v50 = vpop.f32.mrf.mxu1 }
 0x312   : > { %2691 = vst [vmem:[%s4920_s13 + $0x100] sm:$0xff] %v2341_v16  ;;  %2755 = vst [vmem:[%s4920_s13 + $0x300] sm:$0xff] %v2501_v19  ;;  %v2343_v2 = vadd.f32 %v2342_v34, %v4862_v39  ;;  %v2503_v38 = vadd.f32 %v2502_v50, %v1700_v5 }
 0x313   : > { %v2344_v49 = vpop.f32.mrf.mxu0  ;;  %v2504_v56 = vpop.f32.mrf.mxu1 }
 0x314   : > { %2692 = vst [vmem:[%s4920_s13 + $0x108] sm:$0xff] %v2343_v2  ;;  %2756 = vst [vmem:[%s4920_s13 + $0x308] sm:$0xff] %v2503_v38  ;;  %v2345_v40 = vadd.f32 %v2344_v49, %v4866_v52  ;;  %v2505_v35 = vadd.f32 %v2504_v56, %v1705_v13  ;;  %v1735_v2 = vpop.permute.xlu1 %1734 }
 0x315   : > { %v2346_v4 = vpop.f32.mrf.mxu0  ;;  %v2506_v61 = vpop.f32.mrf.mxu1 }
 0x316   : > { %2693 = vst [vmem:[%s4920_s13 + $0x110] sm:$0xff] %v2345_v40  ;;  %2757 = vst [vmem:[%s4920_s13 + $0x310] sm:$0xff] %v2505_v35  ;;  %v2347_v18 = vadd.f32 %v2346_v4, %v4866_v52  ;;  %v2507_v39 = vadd.f32 %v2506_v61, %v1705_v13 }
 0x317   : > { %v2350_v9 = vpop.f32.mrf.mxu0  ;;  %v2510_v33 = vpop.f32.mrf.mxu1 }
 0x318   : > { %2694 = vst [vmem:[%s4920_s13 + $0x118] sm:$0xff] %v2347_v18  ;;  %2758 = vst [vmem:[%s4920_s13 + $0x318] sm:$0xff] %v2507_v39  ;;  %v2351_v21 = vadd.f32 %v2350_v9, %v4871_v58  ;;  %v2511_v23 = vadd.f32 %v2510_v33, %v1710_v12 }
 0x319   : > { %v2352_v6 = vpop.f32.mrf.mxu0  ;;  %v2512_v48 = vpop.f32.mrf.mxu1 }
 0x31a   : > { %2695 = vst [vmem:[%s4920_s13 + $0x120] sm:$0xff] %v2351_v21  ;;  %2759 = vst [vmem:[%s4920_s13 + $0x320] sm:$0xff] %v2511_v23  ;;  %v2353_v20 = vadd.f32 %v2352_v6, %v4871_v58  ;;  %v2513_v52 = vadd.f32 %v2512_v48, %v1710_v12  ;;  %v1740_v12 = vpop.permute.xlu0 %1739  ;;  %v1745_v48 = vpop.permute.xlu1 %1744 }
 0x31b   : > { %v2354_v24 = vpop.f32.mrf.mxu0  ;;  %v2514_v36 = vpop.f32.mrf.mxu1 }
 0x31c   : > { %2696 = vst [vmem:[%s4920_s13 + $0x128] sm:$0xff] %v2353_v20  ;;  %2760 = vst [vmem:[%s4920_s13 + $0x328] sm:$0xff] %v2513_v52  ;;  %v2355_v42 = vadd.f32 %v2354_v24, %v4875_v14  ;;  %v2515_v27 = vadd.f32 %v2514_v36, %v1715_v46 }
 0x31d   : > { %v2356_v10 = vpop.f32.mrf.mxu0  ;;  %v2516_v1 = vpop.f32.mrf.mxu1 }
 0x31e   : > { %2697 = vst [vmem:[%s4920_s13 + $0x130] sm:$0xff] %v2355_v42  ;;  %2761 = vst [vmem:[%s4920_s13 + $0x330] sm:$0xff] %v2515_v27  ;;  %v2357_v54 = vadd.f32 %v2356_v10, %v4875_v14  ;;  %v2517_v58 = vadd.f32 %v2516_v1, %v1715_v46  ;;  %v1750_v10 = vpop.permute.xlu0 %1749 }
 0x31f   : > { %v2360_v44 = vpop.f32.mrf.mxu0  ;;  %v2520_v62 = vpop.f32.mrf.mxu1 }
 0x320   : > { %2698 = vst [vmem:[%s4920_s13 + $0x138] sm:$0xff] %v2357_v54  ;;  %2762 = vst [vmem:[%s4920_s13 + $0x338] sm:$0xff] %v2517_v58  ;;  %v2361_v26 = vadd.f32 %v2360_v44, %v4877_v11  ;;  %v2521_v17 = vadd.f32 %v2520_v62, %v1720_v0 }
 0x321   : > { %v2362_v31 = vpop.f32.mrf.mxu0  ;;  %v2522_v55 = vpop.f32.mrf.mxu1 }
 0x322   : > { %2699 = vst [vmem:[%s4920_s13 + $0x140] sm:$0xff] %v2361_v26  ;;  %2763 = vst [vmem:[%s4920_s13 + $0x340] sm:$0xff] %v2521_v17  ;;  %v2363_v37 = vadd.f32 %v2362_v31, %v4877_v11  ;;  %v2523_v14 = vadd.f32 %v2522_v55, %v1720_v0  ;;  %v1755_v17 = vpop.permute.xlu1 %1754 }
 0x323   : > { %v2364_v59 = vpop.f32.mrf.mxu0  ;;  %v2524_v32 = vpop.f32.mrf.mxu1 }
 0x324   : > { %2700 = vst [vmem:[%s4920_s13 + $0x148] sm:$0xff] %v2363_v37  ;;  %2764 = vst [vmem:[%s4920_s13 + $0x348] sm:$0xff] %v2523_v14  ;;  %v2365_v60 = vadd.f32 %v2364_v59, %v4882_v57  ;;  %v2525_v25 = vadd.f32 %v2524_v32, %v1725_v30 }
 0x325   : > { %v2366_v5 = vpop.f32.mrf.mxu0  ;;  %v2526_v8 = vpop.f32.mrf.mxu1 }
 0x326   : > { %2701 = vst [vmem:[%s4920_s13 + $0x150] sm:$0xff] %v2365_v60  ;;  %2765 = vst [vmem:[%s4920_s13 + $0x350] sm:$0xff] %v2525_v25  ;;  %v2367_v7 = vadd.f32 %v2366_v5, %v4882_v57  ;;  %v2527_v11 = vadd.f32 %v2526_v8, %v1725_v30  ;;  %v1760_v60 = vpop.permute.xlu0 %1759 }
 0x327   : > { %v2370_v43 = vpop.f32.mrf.mxu0  ;;  %v2530_v16 = vpop.f32.mrf.mxu1 }
 0x328   : > { %2702 = vst [vmem:[%s4920_s13 + $0x158] sm:$0xff] %v2367_v7  ;;  %2766 = vst [vmem:[%s4920_s13 + $0x358] sm:$0xff] %v2527_v11  ;;  %v2371_v19 = vadd.f32 %v2370_v43, %v4886_v22  ;;  %v2531_v34 = vadd.f32 %v2530_v16, %v1730_v63  ;;  %v1765_v16 = vpop.permute.xlu1 %1764 }
 0x329   : > { %v2372_v50 = vpop.f32.mrf.mxu0  ;;  %v2532_v13 = vpop.f32.mrf.mxu1 }
 0x32a   : > { %2703 = vst [vmem:[%s4920_s13 + $0x160] sm:$0xff] %v2371_v19  ;;  %2767 = vst [vmem:[%s4920_s13 + $0x360] sm:$0xff] %v2531_v34  ;;  %v2373_v38 = vadd.f32 %v2372_v50, %v4886_v22  ;;  %v2533_v57 = vadd.f32 %v2532_v13, %v1730_v63 }
 0x32b   : > { %v2374_v49 = vpop.f32.mrf.mxu0  ;;  %v2534_v56 = vpop.f32.mrf.mxu1 }
 0x32c   : > { %2704 = vst [vmem:[%s4920_s13 + $0x168] sm:$0xff] %v2373_v38  ;;  %2768 = vst [vmem:[%s4920_s13 + $0x368] sm:$0xff] %v2533_v57  ;;  %v2375_v40 = vadd.f32 %v2374_v49, %v4891_v15  ;;  %v2535_v35 = vadd.f32 %v2534_v56, %v1735_v2  ;;  %v1770_v49 = vpop.permute.xlu0 %1769 }
 0x32d   : > { %v2376_v4 = vpop.f32.mrf.mxu0  ;;  %v2536_v61 = vpop.f32.mrf.mxu1 }
 0x32e   : > { %2705 = vst [vmem:[%s4920_s13 + $0x170] sm:$0xff] %v2375_v40  ;;  %2769 = vst [vmem:[%s4920_s13 + $0x370] sm:$0xff] %v2535_v35  ;;  %v2377_v18 = vadd.f32 %v2376_v4, %v4891_v15  ;;  %v2537_v22 = vadd.f32 %v2536_v61, %v1735_v2 }
 0x32f   : > { %v2380_v39 = vpop.f32.mrf.mxu0  ;;  %v2540_v9 = vpop.f32.mrf.mxu1 }
 0x330   : > { %2706 = vst [vmem:[%s4920_s13 + $0x178] sm:$0xff] %v2377_v18  ;;  %2770 = vst [vmem:[%s4920_s13 + $0x378] sm:$0xff] %v2537_v22  ;;  %v2381_v33 = vadd.f32 %v2380_v39, %v4893_v45  ;;  %v2541_v21 = vadd.f32 %v2540_v9, %v1740_v12  ;;  %v1775_v22 = vpop.permute.xlu1 %1774 }
 0x331   : > { %v2382_v23 = vpop.f32.mrf.mxu0  ;;  %v2542_v6 = vpop.f32.mrf.mxu1 }
 0x332   : > { %2707 = vst [vmem:[%s4920_s13 + $0x180] sm:$0xff] %v2381_v33  ;;  %2771 = vst [vmem:[%s4920_s13 + $0x380] sm:$0xff] %v2541_v21  ;;  %v2383_v46 = vadd.f32 %v2382_v23, %v4893_v45  ;;  %v2543_v15 = vadd.f32 %v2542_v6, %v1740_v12 }
 0x333   : > { %v2384_v20 = vpop.f32.mrf.mxu0  ;;  %v2544_v52 = vpop.f32.mrf.mxu1 }
 0x334   : > { %2708 = vst [vmem:[%s4920_s13 + $0x188] sm:$0xff] %v2383_v46  ;;  %2772 = vst [vmem:[%s4920_s13 + $0x388] sm:$0xff] %v2543_v15  ;;  %v2385_v24 = vadd.f32 %v2384_v20, %v4897_v41  ;;  %v2545_v36 = vadd.f32 %v2544_v52, %v1745_v48  ;;  %v1780_v15 = vpop.permute.xlu0 %1779 }
 0x335   : > { %v2386_v42 = vpop.f32.mrf.mxu0  ;;  %v2546_v27 = vpop.f32.mrf.mxu1 }
 0x336   : > { %2709 = vst [vmem:[%s4920_s13 + $0x190] sm:$0xff] %v2385_v24  ;;  %2773 = vst [vmem:[%s4920_s13 + $0x390] sm:$0xff] %v2545_v36  ;;  %v2387_v1 = vadd.f32 %v2386_v42, %v4897_v41  ;;  %v2547_v45 = vadd.f32 %v2546_v27, %v1745_v48  ;;  %v1785_v42 = vpop.permute.xlu1 %1784 }
 0x337   : > { %v2390_v0 = vpop.f32.mrf.mxu0  ;;  %v2550_v54 = vpop.f32.mrf.mxu1 }
 0x338   : > { %2710 = vst [vmem:[%s4920_s13 + $0x198] sm:$0xff] %v2387_v1  ;;  %2774 = vst [vmem:[%s4920_s13 + $0x398] sm:$0xff] %v2547_v45  ;;  %v2391_v58 = vadd.f32 %v2390_v0, %v4902_v51  ;;  %v2551_v44 = vadd.f32 %v2550_v54, %v1750_v10  ;;  %v1790_v45 = vpop.permute.xlu0 %1789 }
 0x339   : > { %v2392_v62 = vpop.f32.mrf.mxu0  ;;  %v2552_v26 = vpop.f32.mrf.mxu1 }
 0x33a   : > { %2711 = vst [vmem:[%s4920_s13 + $0x1a0] sm:$0xff] %v2391_v58  ;;  %2775 = vst [vmem:[%s4920_s13 + $0x3a0] sm:$0xff] %v2551_v44  ;;  %v2393_v31 = vadd.f32 %v2392_v62, %v4902_v51  ;;  %v2553_v41 = vadd.f32 %v2552_v26, %v1750_v10  ;;  %v1795_v62 = vpop.permute.xlu1 %1794 }
 0x33b   : > { %v2394_v55 = vpop.f32.mrf.mxu0  ;;  %v2554_v30 = vpop.f32.mrf.mxu1 }
 0x33c   : > { %2712 = vst [vmem:[%s4920_s13 + $0x1a8] sm:$0xff] %v2393_v31  ;;  %2776 = vst [vmem:[%s4920_s13 + $0x3a8] sm:$0xff] %v2553_v41  ;;  %v2395_v37 = vadd.f32 %v2394_v55, %v4906_v47  ;;  %v2555_v14 = vadd.f32 %v2554_v30, %v1755_v17  ;;  %v1800_v55 = vpop.permute.xlu0 %1799 }
 0x33d   : > { %v2396_v59 = vpop.f32.mrf.mxu0  ;;  %v2556_v32 = vpop.f32.mrf.mxu1 }
 0x33e   : > { %2713 = vst [vmem:[%s4920_s13 + $0x1b0] sm:$0xff] %v2395_v37  ;;  %2777 = vst [vmem:[%s4920_s13 + $0x3b0] sm:$0xff] %v2555_v14  ;;  %v2397_v25 = vadd.f32 %v2396_v59, %v4906_v47  ;;  %v2557_v51 = vadd.f32 %v2556_v32, %v1755_v17  ;;  %v1805_v32 = vpop.permute.xlu1 %1804 }
 0x33f   : > { %v2400_v5 = vpop.f32.mrf.mxu0  ;;  %v2560_v8 = vpop.f32.mrf.mxu1 }
 0x340   : > { %2714 = vst [vmem:[%s4920_s13 + $0x1b8] sm:$0xff] %v2397_v25  ;;  %2778 = vst [vmem:[%s4920_s13 + $0x3b8] sm:$0xff] %v2557_v51  ;;  %v2401_v63 = vadd.f32 %v2400_v5, %v4908_v53  ;;  %v2561_v7 = vadd.f32 %v2560_v8, %v1760_v60  ;;  %v1810_v8 = vpop.permute.xlu0 %1809 }
 0x341   : > { %v2402_v11 = vpop.f32.mrf.mxu0  ;;  %v2562_v43 = vpop.f32.mrf.mxu1 }
 0x342   : > { %2715 = vst [vmem:[%s4920_s13 + $0x1c0] sm:$0xff] %v2401_v63  ;;  %2779 = vst [vmem:[%s4920_s13 + $0x3c0] sm:$0xff] %v2561_v7  ;;  %v2403_v19 = vadd.f32 %v2402_v11, %v4908_v53  ;;  %v2563_v47 = vadd.f32 %v2562_v43, %v1760_v60 }
 0x343   : > { %v2404_v34 = vpop.f32.mrf.mxu0  ;;  %v2564_v50 = vpop.f32.mrf.mxu1 }
 0x344   : > { %2716 = vst [vmem:[%s4920_s13 + $0x1c8] sm:$0xff] %v2403_v19  ;;  %2780 = vst [vmem:[%s4920_s13 + $0x3c8] sm:$0xff] %v2563_v47  ;;  %v2405_v13 = vadd.f32 %v2404_v34, %v4910_v3  ;;  %v2565_v2 = vadd.f32 %v2564_v50, %v1765_v16 }
 0x345   : > { %v2406_v38 = vpop.f32.mrf.mxu0  ;;  %v2566_v57 = vpop.f32.mrf.mxu1 }
 0x346   : > { %2717 = vst [vmem:[%s4920_s13 + $0x1d0] sm:$0xff] %v2405_v13  ;;  %2781 = vst [vmem:[%s4920_s13 + $0x3d0] sm:$0xff] %v2565_v2  ;;  %v2407_v56 = vadd.f32 %v2406_v38, %v4910_v3  ;;  %v2567_v53 = vadd.f32 %v2566_v57, %v1765_v16  ;;  %v1815_v16 = vpop.permute.xlu1 %1814  ;;  %v1820_v13 = vpop.permute.xlu0 %1819 }
 0x347   : > { %v2410_v40 = vpop.f32.mrf.mxu0  ;;  %v2570_v35 = vpop.f32.mrf.mxu1 }
 0x348   : > { %2718 = vst [vmem:[%s4920_s13 + $0x1d8] sm:$0xff] %v2407_v56  ;;  %2782 = vst [vmem:[%s4920_s13 + $0x3d8] sm:$0xff] %v2567_v53  ;;  %v2411_v4 = vadd.f32 %v2410_v40, %v4913_v28  ;;  %v2571_v61 = vadd.f32 %v2570_v35, %v1770_v49 }
 0x349   : > { %v2412_v12 = vpop.f32.mrf.mxu0  ;;  %v2572_v18 = vpop.f32.mrf.mxu1 }
 0x34a   : > { %2719 = vst [vmem:[%s4920_s13 + $0x1e0] sm:$0xff] %v2411_v4  ;;  %2783 = vst [vmem:[%s4920_s13 + $0x3e0] sm:$0xff] %v2571_v61  ;;  %v2413_v39 = vadd.f32 %v2412_v12, %v4913_v28  ;;  %v2573_v3 = vadd.f32 %v2572_v18, %v1770_v49  ;;  %v1825_v56 = vpop.permute.xlu1 %1824  ;;  %v1830_v61 = vpop.permute.xlu0 %1829 }
 0x34b   : > { %v2414_v9 = vpop.f32.mrf.mxu0  ;;  %v2574_v33 = vpop.f32.mrf.mxu1 }
 0x34c   : > { %2720 = vst [vmem:[%s4920_s13 + $0x1e8] sm:$0xff] %v2413_v39  ;;  %2784 = vst [vmem:[%s4920_s13 + $0x3e8] sm:$0xff] %v2573_v3  ;;  %v2415_v21 = vadd.f32 %v2414_v9, %v4915_v29  ;;  %v2575_v23 = vadd.f32 %v2574_v33, %v1775_v22 }
 0x34d   : > { %v2416_v6 = vpop.f32.mrf.mxu0  ;;  %v2576_v48 = vpop.f32.mrf.mxu1 }
 0x34e   : > { %2721 = vst [vmem:[%s4920_s13 + $0x1f0] sm:$0xff] %v2415_v21  ;;  %2785 = vst [vmem:[%s4920_s13 + $0x3f0] sm:$0xff] %v2575_v23  ;;  %v2417_v46 = vadd.f32 %v2416_v6, %v4915_v29  ;;  %v2577_v28 = vadd.f32 %v2576_v48, %v1775_v22  ;;  %v1835_v3 = vpop.permute.xlu1 %1834  ;;  %v1840_v6 = vpop.permute.xlu0 %1839 }
 0x34f   : > { %v2580_v20 = vpop.f32.mrf.mxu1 }
 0x350   : > { %2722 = vst [vmem:[%s4920_s13 + $0x1f8] sm:$0xff] %v2417_v46  ;;  %2786 = vst [vmem:[%s4920_s13 + $0x3f8] sm:$0xff] %v2577_v28  ;;  %v2581_v52 = vadd.f32 %v2580_v20, %v1780_v15 }
 0x351   : > { %v2582_v24 = vpop.f32.mrf.mxu1 }
 0x352   : > { %2787 = vst [vmem:[%s4920_s13 + $0x400] sm:$0xff] %v2581_v52  ;;  %v2583_v36 = vadd.f32 %v2582_v24, %v1780_v15  ;;  %v1845_v20 = vpop.permute.xlu1 %1844 }
 0x353   : > { %v2584_v27 = vpop.f32.mrf.mxu1 }
 0x354   : > { %2788 = vst [vmem:[%s4920_s13 + $0x408] sm:$0xff] %v2583_v36  ;;  %v2585_v10 = vadd.f32 %v2584_v27, %v1785_v42  ;;  %v1850_v27 = vpop.permute.xlu0 %1849 }
 0x355   : > { %v2586_v1 = vpop.f32.mrf.mxu1 }
 0x356   : > { %2789 = vst [vmem:[%s4920_s13 + $0x410] sm:$0xff] %v2585_v10  ;;  %v2587_v29 = vadd.f32 %v2586_v1, %v1785_v42 }
 0x357   : > { %v2590_v0 = vpop.f32.mrf.mxu1 }
 0x358   : > { %2790 = vst [vmem:[%s4920_s13 + $0x418] sm:$0xff] %v2587_v29  ;;  %v2591_v54 = vadd.f32 %v2590_v0, %v1790_v45  ;;  %v1855_v0 = vpop.permute.xlu1 %1854 }
 0x359   : > { %v2592_v58 = vpop.f32.mrf.mxu1 }
 0x35a   : > { %2791 = vst [vmem:[%s4920_s13 + $0x420] sm:$0xff] %v2591_v54  ;;  %v2593_v44 = vadd.f32 %v2592_v58, %v1790_v45 }
 0x35b   : > { %v2594_v26 = vpop.f32.mrf.mxu1 }
 0x35c   : > { %2792 = vst [vmem:[%s4920_s13 + $0x428] sm:$0xff] %v2593_v44  ;;  %v2595_v17 = vadd.f32 %v2594_v26, %v1795_v62 }
 0x35d   : > { %v2596_v31 = vpop.f32.mrf.mxu1 }
 0x35e   : > { %2793 = vst [vmem:[%s4920_s13 + $0x430] sm:$0xff] %v2595_v17  ;;  %v2597_v41 = vadd.f32 %v2596_v31, %v1795_v62 }
 0x35f   : > { %v2600_v30 = vpop.f32.mrf.mxu1 }
 0x360   : > { %2794 = vst [vmem:[%s4920_s13 + $0x438] sm:$0xff] %v2597_v41  ;;  %v2601_v37 = vadd.f32 %v2600_v30, %v1800_v55 }
 0x361   : > { %v2602_v14 = vpop.f32.mrf.mxu1 }
 0x362   : > { %2795 = vst [vmem:[%s4920_s13 + $0x440] sm:$0xff] %v2601_v37  ;;  %v2603_v59 = vadd.f32 %v2602_v14, %v1800_v55 }
 0x363   : > { %v2604_v60 = vpop.f32.mrf.mxu1 }
 0x364   : > { %2796 = vst [vmem:[%s4920_s13 + $0x448] sm:$0xff] %v2603_v59  ;;  %v2605_v25 = vadd.f32 %v2604_v60, %v1805_v32 }
 0x365   : > { %v2606_v51 = vpop.f32.mrf.mxu1 }
 0x366   : > { %2797 = vst [vmem:[%s4920_s13 + $0x450] sm:$0xff] %v2605_v25  ;;  %v2607_v5 = vadd.f32 %v2606_v51, %v1805_v32 }
 0x367   : > { %v2610_v63 = vpop.f32.mrf.mxu1 }
 0x368   : > { %2798 = vst [vmem:[%s4920_s13 + $0x458] sm:$0xff] %v2607_v5  ;;  %v2611_v7 = vadd.f32 %v2610_v63, %v1810_v8 }
 0x369   : > { %v2612_v11 = vpop.f32.mrf.mxu1 }
 0x36a   : > { %2799 = vst [vmem:[%s4920_s13 + $0x460] sm:$0xff] %v2611_v7  ;;  %v2613_v43 = vadd.f32 %v2612_v11, %v1810_v8 }
 0x36b   : > { %v2614_v19 = vpop.f32.mrf.mxu1 }
 0x36c   : > { %2800 = vst [vmem:[%s4920_s13 + $0x468] sm:$0xff] %v2613_v43  ;;  %v2615_v47 = vadd.f32 %v2614_v19, %v1815_v16 }
 0x36d   : > { %v2616_v34 = vpop.f32.mrf.mxu1 }
 0x36e   : > { %2801 = vst [vmem:[%s4920_s13 + $0x470] sm:$0xff] %v2615_v47  ;;  %v2617_v50 = vadd.f32 %v2616_v34, %v1815_v16 }
 0x36f   : > { %v2620_v2 = vpop.f32.mrf.mxu1 }
 0x370   : > { %2802 = vst [vmem:[%s4920_s13 + $0x478] sm:$0xff] %v2617_v50  ;;  %v2621_v38 = vadd.f32 %v2620_v2, %v1820_v13 }
 0x371   : > { %v2622_v57 = vpop.f32.mrf.mxu1 }
 0x372   : > { %2803 = vst [vmem:[%s4920_s13 + $0x480] sm:$0xff] %v2621_v38  ;;  %v2623_v49 = vadd.f32 %v2622_v57, %v1820_v13 }
 0x373   : > { %v2624_v53 = vpop.f32.mrf.mxu1 }
 0x374   : > { %2804 = vst [vmem:[%s4920_s13 + $0x488] sm:$0xff] %v2623_v49  ;;  %v2625_v40 = vadd.f32 %v2624_v53, %v1825_v56 }
 0x375   : > { %v2626_v35 = vpop.f32.mrf.mxu1 }
 0x376   : > { %2805 = vst [vmem:[%s4920_s13 + $0x490] sm:$0xff] %v2625_v40  ;;  %v2627_v4 = vadd.f32 %v2626_v35, %v1825_v56 }
 0x377   : > { %v2630_v12 = vpop.f32.mrf.mxu1 }
 0x378   : > { %2806 = vst [vmem:[%s4920_s13 + $0x498] sm:$0xff] %v2627_v4  ;;  %v2631_v18 = vadd.f32 %v2630_v12, %v1830_v61 }
 0x379   : > { %v2632_v22 = vpop.f32.mrf.mxu1 }
 0x37a   : > { %2807 = vst [vmem:[%s4920_s13 + $0x4a0] sm:$0xff] %v2631_v18  ;;  %v2633_v39 = vadd.f32 %v2632_v22, %v1830_v61 }
 0x37b   : > { %v2634_v9 = vpop.f32.mrf.mxu1 }
 0x37c   : > { %2808 = vst [vmem:[%s4920_s13 + $0x4a8] sm:$0xff] %v2633_v39  ;;  %v2635_v33 = vadd.f32 %v2634_v9, %v1835_v3 }
 0x37d   : > { %v2636_v21 = vpop.f32.mrf.mxu1 }
 0x37e   : > { %2809 = vst [vmem:[%s4920_s13 + $0x4b0] sm:$0xff] %v2635_v33  ;;  %v2637_v23 = vadd.f32 %v2636_v21, %v1835_v3 }
 0x37f   : > { %v2640_v48 = vpop.f32.mrf.mxu1 }
 0x380   : > { %2810 = vst [vmem:[%s4920_s13 + $0x4b8] sm:$0xff] %v2637_v23  ;;  %v2641_v46 = vadd.f32 %v2640_v48, %v1840_v6 }
 0x381   : > { %v2642_v28 = vpop.f32.mrf.mxu1 }
 0x382   : > { %2811 = vst [vmem:[%s4920_s13 + $0x4c0] sm:$0xff] %v2641_v46  ;;  %v2643_v15 = vadd.f32 %v2642_v28, %v1840_v6 }
 0x383   : > { %v2644_v52 = vpop.f32.mrf.mxu1 }
 0x384   : > { %2812 = vst [vmem:[%s4920_s13 + $0x4c8] sm:$0xff] %v2643_v15  ;;  %v2645_v24 = vadd.f32 %v2644_v52, %v1845_v20 }
 0x385   : > { %v2646_v36 = vpop.f32.mrf.mxu1 }
 0x386   : > { %2813 = vst [vmem:[%s4920_s13 + $0x4d0] sm:$0xff] %v2645_v24  ;;  %v2647_v42 = vadd.f32 %v2646_v36, %v1845_v20 }
 0x387   : > { %v2650_v10 = vpop.f32.mrf.mxu1 }
 0x388   : > { %2814 = vst [vmem:[%s4920_s13 + $0x4d8] sm:$0xff] %v2647_v42  ;;  %v2651_v1 = vadd.f32 %v2650_v10, %v1850_v27 }
 0x389   : > { %v2652_v29 = vpop.f32.mrf.mxu1 }
 0x38a   : > { %2815 = vst [vmem:[%s4920_s13 + $0x4e0] sm:$0xff] %v2651_v1  ;;  %v2653_v45 = vadd.f32 %v2652_v29, %v1850_v27 }
 0x38b   : > { %v2654_v54 = vpop.f32.mrf.mxu1 }
 0x38c   : > { %2816 = vst [vmem:[%s4920_s13 + $0x4e8] sm:$0xff] %v2653_v45  ;;  %v2655_v58 = vadd.f32 %v2654_v54, %v1855_v0 }
 0x38d   : > { %v2656_v44 = vpop.f32.mrf.mxu1 }
 0x38e   : > { %2817 = vst [vmem:[%s4920_s13 + $0x4f0] sm:$0xff] %v2655_v58  ;;  %v2657_v62 = vadd.f32 %v2656_v44, %v1855_v0 }
 0x390   : > { %2818 = vst [vmem:[%s4920_s13 + $0x4f8] sm:$0xff] %v2657_v62 }
 0x391   : > { %3669 = shalt.err (!%p3666_p6)
}
 0x392   : > { %s3670_s9 = scalar_lea.hbm %s5148_s24, 20480  ;;  %s3674_s10 = scalar_lea.hbm %s5204_s4, 40960 }
 0x393   : > { %p3671_p4 = scmp.ne.s32.totalorder %s5148_s24, %s3670_s9  ;;  %p3675_p13 = scmp.lt.s32.totalorder %s5148_s24, %s5204_s4 }
 0x394   : > { %p3676_p2 = scmp.lt.s32.totalorder %s3674_s10, %s3670_s9 }
 0x395   : > { %p3672_p7 = pnand %p3671_p4, %p3821_p9 }
 0x396   : > { %p3677_p8 = por %p3676_p2, %p3675_p13 }
 0x397   : > { %p3673_p10 = pneg %p3672_p7 }
 0x399   : > { %p3678_p12 = pnand %p3677_p8, %p3673_p10 }
 0x39b   : > { %3681 = shalt.err (!%p3678_p12)
}
 0x39c   : > { %s3743_s7 = smov 256   ;;  %s3744_s21 = smov 16  }
 0x39d   : > { %3481 = dma.vmem_to_hbm [thread:$0]  (%p3821_p9), %s5150_s14, 20480, %s5148_s24, %s2820_s18, %s3743_s7, %s3743_s7, %s3744_s21  }
 0x39e PF: > { %s2850_s22 = sand.u32 1, %s3716_s15   ;;  %p5217_p0 = scmp.ge.s32.totalorder %s3736_s20, 2 }
 0x39f   : > { %s2851_s27 = scalar_lea.sflag [#allocation4], %s2850_s22 }
 0x3a0   : > { %p3488_p1 = pnand %p5217_p0, %p3828_p11 }
 0x3a2   : > { %p3489_p3 = pneg %p3488_p1 }
 0x3a4   : > { %3711 = dma.done.wait (%p3489_p3), %s2851_s27, 20480  }
 0x3a5   : > { %3713 = vsyncadd (%p3489_p3), %s2851_s27, 4294946816  ;;  %s20_s20 = sadd.s32 1, %s3736_s20   ;;  %s5218_s15 = smov %s3720_s16 }
 0x3a6   : > { %p17_p5 = scmp.ge.s32.totalorder %s20_s20, 4   ;;  %s5219_s16 = smov %s3724_s17 }
 0x3a7   : > { %s5220_s17 = smov %s3826_s29  ;;  %s5221_s18 = smov %s3732_s19 }
 0x3a8   : > { %s5222_s19 = smov %s5224_s23  ;;  %19 = sbr.rel (!%p17_p5) target bundleno = 6 (0x6), region = 81 }
 0x3ad   :  { %2856 = vsyncpa [#allocation3], 1 }
 0x3ae   :  { %2858 = vsyncpa [#allocation3 + $0x1], 1 }
 0x3af   :  { %2859 = vsyncpa [#allocation4], 1 }
 0x3b0   :  { %2861 = vsyncpa [#allocation4 + $0x1], 1 }

</bundles_post_ra>
